<compile_context>
chip_gen: v6e
topology: v6e:2x2x1
jax: 0.10.0
libtpu: 0.0.40
codegen_flags: <defaults>
</compile_context>

<pallas_src>
import functools

import jax
import jax.numpy as jnp
from jax.experimental import pallas as pl
from jax.experimental.pallas import tpu as pltpu


def _mha_kernel(x_ref, wqkv_ref, wo_ref, bo_ref, o_ref, *, n_heads, head_dim,
                block_b):
    # x_ref/o_ref: (block_b, S, E); weights grid-invariant.
    _, S, E = x_ref.shape
    D = n_heads * head_dim
    R = block_b * S
    cdt = x_ref.dtype            # MXU operand dtype (bf16 in -> bf16 MXU, f32 acc)

    # ---- one fused, lane-dense QKV projection over all packed rows --------
    x2d = x_ref[...].reshape(R, E)                                   # free merge
    qkv = jnp.dot(x2d, wqkv_ref[...],
                  preferred_element_type=jnp.float32)                # (R, 3D) f32

    # Reference multiplies by sqrt(head_dim); fold the scale into q once.
    scale = jnp.float32(float(head_dim) ** 0.5)
    q = qkv[:, 0:D] * scale                                          # (R, D) f32
    k = qkv[:, D:2 * D]
    v = qkv[:, 2 * D:3 * D]

    outs = []
    for b in range(block_b):     # small static loop over packed batch elements;
        rows = slice(b * S, (b + 1) * S)          # each iteration is ALL heads at once
        # head-major (NH, S, Dh): one lane-layout-aware relayout per tensor
        qb = pltpu.einshape("snd->nsd",
                            q[rows].reshape(S, n_heads, head_dim)).astype(cdt)
        kb = pltpu.einshape("snd->nsd",
                            k[rows].reshape(S, n_heads, head_dim)).astype(cdt)
        vb = pltpu.einshape("snd->nsd",
                            v[rows].reshape(S, n_heads, head_dim)).astype(cdt)

        # All heads' score matmuls issued back-to-back (batched dot_general).
        scores = jnp.einsum('nsd,ntd->nst', qb, kb,
                            preferred_element_type=jnp.float32)      # (NH, S, S)

        # Numerically stable softmax in f32; reciprocal on the EUP.
        m = jnp.max(scores, axis=-1, keepdims=True)
        p = jnp.exp(scores - m)
        denom = jnp.sum(p, axis=-1, keepdims=True)
        w = p * pl.reciprocal(denom, approx=True)

        ob = jnp.einsum('nst,ntd->nsd', w.astype(cdt), vb,
                        preferred_element_type=jnp.float32)          # (NH, S, Dh) f32
        # Back to token-major, lane-dense (S, D): a single relayout instead of
        # NH lane-offset masked writes from a concat.
        outs.append(pltpu.einshape("nsd->snd", ob).reshape(S, D))

    concat = outs[0] if block_b == 1 else jnp.concatenate(outs, axis=0)  # (R, D), row stack

    # Single full-width (K = D) output projection with bias.
    out = jnp.dot(concat.astype(cdt), wo_ref[...],
                  preferred_element_type=jnp.float32)
    out = out + bo_ref[...].astype(jnp.float32)
    o_ref[...] = out.reshape(block_b, S, E).astype(o_ref.dtype)


def multi_head_attention(x, w_qkv, w_out, b_out, *, n_heads, head_dim,
                         block_b=None):
    """x: (B, S, E); w_qkv: (E, 3*n_heads*head_dim); w_out: (D, E); b_out: (E,)."""
    B, S, E = x.shape
    D = n_heads * head_dim
    assert w_qkv.shape == (E, 3 * D)
    assert w_out.shape == (D, E)
    assert b_out.shape == (E,)

    if block_b is None:
        # Pack enough batch rows per grid step to fill the MXU M dim, but keep
        # >= 2 grid steps so both v7x TensorCores get work (neutral on v5e/v6e).
        rows_target = max(1, 128 // max(S, 1))
        block_b = max(1, min(B // 2 if B >= 2 else B, rows_target))
        while B % block_b:
            block_b -= 1
    assert B % block_b == 0

    b_out2d = b_out.reshape(1, E)

    # Explicit scoped-VMEM budget (v5e default is only 16 MiB): resident set ~=
    # double-buffered weights + double-buffered x/out blocks + f32 intermediates.
    w_item = jnp.dtype(w_qkv.dtype).itemsize
    x_item = jnp.dtype(x.dtype).itemsize
    weights_b = 2 * (E * 3 * D + D * E + E) * w_item
    io_b = 2 * 2 * block_b * S * E * x_item
    acts_b = 4 * (block_b * S * (3 * D + D + E)
                  + 3 * n_heads * S * S + 6 * n_heads * S * head_dim)
    vmem_limit = int(min(max(2 * (weights_b + io_b + acts_b), 32 * 1024 * 1024),
                         56 * 1024 * 1024))

    kernel = functools.partial(_mha_kernel, n_heads=n_heads, head_dim=head_dim,
                               block_b=block_b)
    return pl.pallas_call(
        kernel,
        out_shape=jax.ShapeDtypeStruct((B, S, E), x.dtype),
        grid_spec=pltpu.PrefetchScalarGridSpec(
            num_scalar_prefetch=0,
            grid=(B // block_b,),
            in_specs=[
                pl.BlockSpec((block_b, S, E), lambda i: (i, 0, 0)),
                # grid-invariant weights / bias (index_map constant across steps)
                pl.BlockSpec((E, 3 * D), lambda i: (0, 0)),
                pl.BlockSpec((D, E), lambda i: (0, 0)),
                pl.BlockSpec((1, E), lambda i: (0, 0)),
            ],
            out_specs=pl.BlockSpec((block_b, S, E), lambda i: (i, 0, 0)),
        ),
        compiler_params=pltpu.CompilerParams(
            dimension_semantics=("parallel",),
            vmem_limit_bytes=vmem_limit),
    )(x, w_qkv, w_out, b_out2d)


def multi_head_attention_ref(x, w_qkv, w_out, b_out, *, n_heads, head_dim):
    B, S, E = x.shape
    D = n_heads * head_dim
    qkv = x @ w_qkv                                   # (B, S, 3D)
    q = qkv[..., 0:D] * (head_dim ** 0.5)
    k = qkv[..., D:2 * D]
    v = qkv[..., 2 * D:3 * D]
    qh = q.reshape(B, S, n_heads, head_dim).transpose(0, 2, 1, 3)
    kh = k.reshape(B, S, n_heads, head_dim).transpose(0, 2, 1, 3)
    vh = v.reshape(B, S, n_heads, head_dim).transpose(0, 2, 1, 3)
    scores = qh @ jnp.swapaxes(kh, -1, -2)            # (B, NH, S, S)
    w = jax.nn.softmax(scores, axis=-1)
    oh = w @ vh                                       # (B, NH, S, Dh)
    concat = oh.transpose(0, 2, 1, 3).reshape(B, S, D)
    return concat @ w_out + b_out


if __name__ == "__main__":
    # Small CLIP-like shapes: embed_dim == n_heads * head_dim for lane-dense tiles.
    # B=4 so the default block_b=2 exercises row packing AND keeps 2 grid steps.
    B, S, E = 4, 8, 128
    n_heads, head_dim = 8, 16
    D = n_heads * head_dim

    key = jax.random.PRNGKey(0)
    kx, kqkv, kwo, kbo = jax.random.split(key, 4)

    x = jax.random.normal(kx, (B, S, E), dtype=jnp.float32)
    bound_in = 1.0 / (E ** 0.5)
    bound_out = 1.0 / (D ** 0.5)
    # Fused, transposed weights: columns [Q_all | K_all | V_all], head-major blocks.
    w_qkv = jax.random.uniform(kqkv, (E, 3 * D), jnp.float32, -bound_in, bound_in)
    w_out = jax.random.uniform(kwo, (D, E), jnp.float32, -bound_out, bound_out)
    b_out = jax.random.uniform(kbo, (E,), jnp.float32, -bound_out, bound_out)

    # --- f32 path: tight parity with the reference ---------------------------
    out = jax.block_until_ready(
        multi_head_attention(x, w_qkv, w_out, b_out,
                             n_heads=n_heads, head_dim=head_dim))
    ref = multi_head_attention_ref(x, w_qkv, w_out, b_out,
                                   n_heads=n_heads, head_dim=head_dim)
    assert out.shape == (B, S, E)
    assert jnp.allclose(out, ref, atol=5e-3, rtol=5e-3), \
        float(jnp.max(jnp.abs(out - ref)))

    # --- bf16 path: bf16 MXU operands, f32 accumulation / softmax ------------
    xb = x.astype(jnp.bfloat16)
    wq_b = w_qkv.astype(jnp.bfloat16)
    wo_b = w_out.astype(jnp.bfloat16)
    bo_b = b_out.astype(jnp.bfloat16)
    out_bf = jax.block_until_ready(
        multi_head_attention(xb, wq_b, wo_b, bo_b,
                             n_heads=n_heads, head_dim=head_dim))
    ref_bf = multi_head_attention_ref(
        xb.astype(jnp.float32), wq_b.astype(jnp.float32),
        wo_b.astype(jnp.float32), bo_b.astype(jnp.float32),
        n_heads=n_heads, head_dim=head_dim)
    assert out_bf.shape == (B, S, E)
    assert jnp.allclose(out_bf.astype(jnp.float32), ref_bf, atol=1e-1, rtol=1e-1), \
        float(jnp.max(jnp.abs(out_bf.astype(jnp.float32) - ref_bf)))

    print("KERNEL_OK")
</pallas_src>

<mosaic_0001>
module attributes {stable_mosaic.version = 11 : i64} {
  func.func @_mha_kernel(%arg0: i32, %arg1: memref<2x8x128xf32, #tpu.memory_space<vmem>>, %arg2: memref<128x384xf32, #tpu.memory_space<vmem>>, %arg3: memref<128x128xf32, #tpu.memory_space<vmem>>, %arg4: memref<1x128xf32, #tpu.memory_space<vmem>>, %arg5: memref<2x8x128xf32, #tpu.memory_space<vmem>>) attributes {dimension_semantics = [#tpu.dimension_semantics<parallel>], iteration_bounds = array<i64: 2>, scalar_prefetch = 0 : i64, scratch_operands = 0 : i64, tpu.core_type = #tpu.core_type<tc>, window_params = [{transform_indices = @transform_0, window_bounds = array<i64: 2, 8, 128>}, {pipeline_mode = #tpu.pipeline_mode<synchronous>, transform_indices = @transform_1, window_bounds = array<i64: 128, 384>}, {pipeline_mode = #tpu.pipeline_mode<synchronous>, transform_indices = @transform_2, window_bounds = array<i64: 128, 128>}, {pipeline_mode = #tpu.pipeline_mode<synchronous>, transform_indices = @transform_3, window_bounds = array<i64: 1, 128>}, {transform_indices = @transform_4, window_bounds = array<i64: 2, 8, 128>}]} {
    %c0 = arith.constant 0 : index
    %c0_0 = arith.constant 0 : index
    %c0_1 = arith.constant 0 : index
    %0 = vector.load %arg1[%c0, %c0_0, %c0_1] : memref<2x8x128xf32, #tpu.memory_space<vmem>>, vector<2x8x128xf32>
    %1 = vector.shape_cast %0 : vector<2x8x128xf32> to vector<16x128xf32>
    %c0_2 = arith.constant 0 : index
    %c0_3 = arith.constant 0 : index
    %2 = vector.load %arg2[%c0_2, %c0_3] : memref<128x384xf32, #tpu.memory_space<vmem>>, vector<128x384xf32>
    %cst = arith.constant dense<0.000000e+00> : vector<16x384xf32>
    %3 = tpu.matmul %1, %2, %cst {dimension_numbers = #tpu.dot_dimension_numbers<[1], [0], [0], [1], [0, 0, 1, 1], [], []>} : vector<16x128xf32>, vector<128x384xf32>, vector<16x384xf32> -> vector<16x384xf32>
    %4 = vector.extract_strided_slice %3 {offsets = [0, 0], sizes = [16, 128], strides = [1, 1]} : vector<16x384xf32> to vector<16x128xf32>
    %cst_4 = arith.constant 4.000000e+00 : f32
    %5 = vector.broadcast %cst_4 : f32 to vector<16x128xf32>
    %6 = arith.mulf %4, %5 : vector<16x128xf32>
    %7 = vector.extract_strided_slice %3 {offsets = [0, 128], sizes = [16, 128], strides = [1, 1]} : vector<16x384xf32> to vector<16x128xf32>
    %8 = vector.extract_strided_slice %3 {offsets = [0, 256], sizes = [16, 128], strides = [1, 1]} : vector<16x384xf32> to vector<16x128xf32>
    %9 = vector.extract_strided_slice %6 {offsets = [0, 0], sizes = [8, 128], strides = [1, 1]} : vector<16x128xf32> to vector<8x128xf32>
    %10 = vector.shape_cast %9 : vector<8x128xf32> to vector<8x8x16xf32>
    %11 = tpu.transpose %10, [1, 0, 2] : vector<8x8x16xf32> -> vector<8x8x16xf32>
    %12 = vector.extract_strided_slice %7 {offsets = [0, 0], sizes = [8, 128], strides = [1, 1]} : vector<16x128xf32> to vector<8x128xf32>
    %13 = vector.shape_cast %12 : vector<8x128xf32> to vector<8x8x16xf32>
    %14 = tpu.transpose %13, [1, 0, 2] : vector<8x8x16xf32> -> vector<8x8x16xf32>
    %15 = vector.extract_strided_slice %8 {offsets = [0, 0], sizes = [8, 128], strides = [1, 1]} : vector<16x128xf32> to vector<8x128xf32>
    %16 = vector.shape_cast %15 : vector<8x128xf32> to vector<8x8x16xf32>
    %17 = tpu.transpose %16, [1, 0, 2] : vector<8x8x16xf32> -> vector<8x8x16xf32>
    "tpu.trace_start"() <{level = 10 : i32, message = "nsd,ntd->nst"}> : () -> ()
    %cst_5 = arith.constant dense<0.000000e+00> : vector<8x8x8xf32>
    %18 = tpu.matmul %11, %14, %cst_5 {dimension_numbers = #tpu.dot_dimension_numbers<[2], [2], [1], [1], [0, 0, 0, 1, 1, 1], [0], [0]>} : vector<8x8x16xf32>, vector<8x8x16xf32>, vector<8x8x8xf32> -> vector<8x8x8xf32>
    "tpu.trace_stop"() : () -> ()
    %cst_6 = arith.constant dense<0xFF800000> : vector<8x8xf32>
    %19 = vector.multi_reduction <maximumf>, %18, %cst_6 [2] : vector<8x8x8xf32> to vector<8x8xf32>
    %20 = vector.shape_cast %19 : vector<8x8xf32> to vector<8x8x1xf32>
    %21 = vector.broadcast %20 : vector<8x8x1xf32> to vector<8x8x8xf32>
    %22 = arith.subf %18, %21 : vector<8x8x8xf32>
    %23 = math.exp %22 : vector<8x8x8xf32>
    %cst_7 = arith.constant dense<0.000000e+00> : vector<8x8xf32>
    %24 = vector.multi_reduction <add>, %23, %cst_7 [2] : vector<8x8x8xf32> to vector<8x8xf32>
    %25 = vector.shape_cast %24 : vector<8x8xf32> to vector<8x8x1xf32>
    %26 = tpu.reciprocal %25 {approx = true} : vector<8x8x1xf32> -> vector<8x8x1xf32>
    %27 = vector.broadcast %26 : vector<8x8x1xf32> to vector<8x8x8xf32>
    %28 = arith.mulf %23, %27 : vector<8x8x8xf32>
    "tpu.trace_start"() <{level = 10 : i32, message = "nst,ntd->nsd"}> : () -> ()
    %cst_8 = arith.constant dense<0.000000e+00> : vector<8x8x16xf32>
    %29 = tpu.matmul %28, %17, %cst_8 {dimension_numbers = #tpu.dot_dimension_numbers<[2], [1], [1], [2], [0, 0, 0, 1, 1, 2], [0], [0]>} : vector<8x8x8xf32>, vector<8x8x16xf32>, vector<8x8x16xf32> -> vector<8x8x16xf32>
    "tpu.trace_stop"() : () -> ()
    %30 = tpu.transpose %29, [1, 0, 2] : vector<8x8x16xf32> -> vector<8x8x16xf32>
    %31 = vector.shape_cast %30 : vector<8x8x16xf32> to vector<8x128xf32>
    %32 = vector.extract_strided_slice %6 {offsets = [8, 0], sizes = [8, 128], strides = [1, 1]} : vector<16x128xf32> to vector<8x128xf32>
    %33 = vector.shape_cast %32 : vector<8x128xf32> to vector<8x8x16xf32>
    %34 = tpu.transpose %33, [1, 0, 2] : vector<8x8x16xf32> -> vector<8x8x16xf32>
    %35 = vector.extract_strided_slice %7 {offsets = [8, 0], sizes = [8, 128], strides = [1, 1]} : vector<16x128xf32> to vector<8x128xf32>
    %36 = vector.shape_cast %35 : vector<8x128xf32> to vector<8x8x16xf32>
    %37 = tpu.transpose %36, [1, 0, 2] : vector<8x8x16xf32> -> vector<8x8x16xf32>
    %38 = vector.extract_strided_slice %8 {offsets = [8, 0], sizes = [8, 128], strides = [1, 1]} : vector<16x128xf32> to vector<8x128xf32>
    %39 = vector.shape_cast %38 : vector<8x128xf32> to vector<8x8x16xf32>
    %40 = tpu.transpose %39, [1, 0, 2] : vector<8x8x16xf32> -> vector<8x8x16xf32>
    "tpu.trace_start"() <{level = 10 : i32, message = "nsd,ntd->nst"}> : () -> ()
    %cst_9 = arith.constant dense<0.000000e+00> : vector<8x8x8xf32>
    %41 = tpu.matmul %34, %37, %cst_9 {dimension_numbers = #tpu.dot_dimension_numbers<[2], [2], [1], [1], [0, 0, 0, 1, 1, 1], [0], [0]>} : vector<8x8x16xf32>, vector<8x8x16xf32>, vector<8x8x8xf32> -> vector<8x8x8xf32>
    "tpu.trace_stop"() : () -> ()
    %cst_10 = arith.constant dense<0xFF800000> : vector<8x8xf32>
    %42 = vector.multi_reduction <maximumf>, %41, %cst_10 [2] : vector<8x8x8xf32> to vector<8x8xf32>
    %43 = vector.shape_cast %42 : vector<8x8xf32> to vector<8x8x1xf32>
    %44 = vector.broadcast %43 : vector<8x8x1xf32> to vector<8x8x8xf32>
    %45 = arith.subf %41, %44 : vector<8x8x8xf32>
    %46 = math.exp %45 : vector<8x8x8xf32>
    %cst_11 = arith.constant dense<0.000000e+00> : vector<8x8xf32>
    %47 = vector.multi_reduction <add>, %46, %cst_11 [2] : vector<8x8x8xf32> to vector<8x8xf32>
    %48 = vector.shape_cast %47 : vector<8x8xf32> to vector<8x8x1xf32>
    %49 = tpu.reciprocal %48 {approx = true} : vector<8x8x1xf32> -> vector<8x8x1xf32>
    %50 = vector.broadcast %49 : vector<8x8x1xf32> to vector<8x8x8xf32>
    %51 = arith.mulf %46, %50 : vector<8x8x8xf32>
    "tpu.trace_start"() <{level = 10 : i32, message = "nst,ntd->nsd"}> : () -> ()
    %cst_12 = arith.constant dense<0.000000e+00> : vector<8x8x16xf32>
    %52 = tpu.matmul %51, %40, %cst_12 {dimension_numbers = #tpu.dot_dimension_numbers<[2], [1], [1], [2], [0, 0, 0, 1, 1, 2], [0], [0]>} : vector<8x8x8xf32>, vector<8x8x16xf32>, vector<8x8x16xf32> -> vector<8x8x16xf32>
    "tpu.trace_stop"() : () -> ()
    %53 = tpu.transpose %52, [1, 0, 2] : vector<8x8x16xf32> -> vector<8x8x16xf32>
    %54 = vector.shape_cast %53 : vector<8x8x16xf32> to vector<8x128xf32>
    %55 = tpu.concatenate %31, %54 in 0 : vector<8x128xf32>, vector<8x128xf32> -> vector<16x128xf32>
    %c0_13 = arith.constant 0 : index
    %c0_14 = arith.constant 0 : index
    %56 = vector.load %arg3[%c0_13, %c0_14] : memref<128x128xf32, #tpu.memory_space<vmem>>, vector<128x128xf32>
    %cst_15 = arith.constant dense<0.000000e+00> : vector<16x128xf32>
    %57 = tpu.matmul %55, %56, %cst_15 {dimension_numbers = #tpu.dot_dimension_numbers<[1], [0], [0], [1], [0, 0, 1, 1], [], []>} : vector<16x128xf32>, vector<128x128xf32>, vector<16x128xf32> -> vector<16x128xf32>
    %c0_16 = arith.constant 0 : index
    %c0_17 = arith.constant 0 : index
    %58 = vector.load %arg4[%c0_16, %c0_17] : memref<1x128xf32, #tpu.memory_space<vmem>>, vector<1x128xf32>
    %59 = vector.broadcast %58 : vector<1x128xf32> to vector<16x128xf32>
    %60 = arith.addf %57, %59 : vector<16x128xf32>
    %61 = vector.shape_cast %60 : vector<16x128xf32> to vector<2x8x128xf32>
    %c0_18 = arith.constant 0 : index
    %c0_19 = arith.constant 0 : index
    %c0_20 = arith.constant 0 : index
    %62 = vector.load %arg5[%c0_18, %c0_19, %c0_20] : memref<2x8x128xf32, #tpu.memory_space<vmem>>, vector<2x8x128xf32>
    tpu.vector_store %arg5[%c0_18, %c0_19, %c0_20], %61 {strides = array<i32>} : memref<2x8x128xf32, #tpu.memory_space<vmem>>, vector<2x8x128xf32>,
    return
  }
  func.func @transform_0(%arg0: i32) -> (i32, i32, i32) {
    %c0_i32 = arith.constant 0 : i32
    %c0_i32_0 = arith.constant 0 : i32
    %c0_i32_1 = arith.constant 0 : i32
    return %arg0, %c0_i32, %c0_i32_0 : i32, i32, i32
  }
  func.func @transform_1(%arg0: i32) -> (i32, i32) {
    %c0_i32 = arith.constant 0 : i32
    %c0_i32_0 = arith.constant 0 : i32
    %c0_i32_1 = arith.constant 0 : i32
    return %c0_i32, %c0_i32_0 : i32, i32
  }
  func.func @transform_2(%arg0: i32) -> (i32, i32) {
    %c0_i32 = arith.constant 0 : i32
    %c0_i32_0 = arith.constant 0 : i32
    %c0_i32_1 = arith.constant 0 : i32
    return %c0_i32, %c0_i32_0 : i32, i32
  }
  func.func @transform_3(%arg0: i32) -> (i32, i32) {
    %c0_i32 = arith.constant 0 : i32
    %c0_i32_0 = arith.constant 0 : i32
    %c0_i32_1 = arith.constant 0 : i32
    return %c0_i32, %c0_i32_0 : i32, i32
  }
  func.func @transform_4(%arg0: i32) -> (i32, i32, i32) {
    %c0_i32 = arith.constant 0 : i32
    %c0_i32_0 = arith.constant 0 : i32
    %c0_i32_1 = arith.constant 0 : i32
    return %arg0, %c0_i32, %c0_i32_0 : i32, i32, i32
  }
}

</mosaic_0001>

<bundles_post_ra>
// kernel: tpu_custom_call.1
= control target key start
LH: loop header
LB: loop body
LE: loop exit
PB: predicated region body
PF: predicated region fallthrough
CT: control target
= control target key end

     0   :  { %9 = vsyncpa [#allocation3], 0  ;;  %s7533_s0 = inlined_call_operand.hbm [shape: f32[4,8,128], index: 0, kind: input, shape index: {}]   ;;  %s7534_s1 = inlined_call_operand.hbm [shape: f32[128,384], index: 1, kind: input, shape index: {}]   ;;  %s7535_s2 = inlined_call_operand.hbm [shape: f32[128,128], index: 2, kind: input, shape index: {}]   ;;  %s7536_s3 = inlined_call_operand.vmem [shape: f32[1,128], index: 3, kind: input, shape index: {}]   ;;  %s7537_s4 = inlined_call_operand.hbm [shape: f32[4,8,128], index: 4, kind: output, shape index: {}]  }
   0x1   :  { %11 = vsyncpa [#allocation3 + $0x1], 0 }
   0x2   :  { %12 = vsyncpa [#allocation6], 0 }
   0x3   :  { %13 = vsyncpa [#allocation4], 0 }
   0x4   :  { %15 = vsyncpa [#allocation4 + $0x1], 0  ;;  %s6445_s15 = smov 0   ;;  %s6447_s16 = smov 0  }
   0x5   :  { %s6449_s17 = smov 0   ;;  %s6451_s18 = smov 0  }
   0x6 LB: > { %s6466_s19 = sadd.s32 4294967295, %s6397_s18   ;;  %s5603_s20 = sadd.s32 4294967294, %s6397_s18   ;;  %s6397_s18 = sphi %s6451_s18, %s7559_s18   ;;  %s6393_s17 = sphi %s6449_s17, %s7558_s17   ;;  %s6389_s16 = sphi %s6447_s16, %s7557_s16   ;;  %s6385_s15 = sphi %s6445_s15, %s7556_s15  }
   0x7   : > { %p41_p0 = scmp.ne.s32.totalorder %s6389_s16, %s6385_s15  ;;  %p7538_p1 = scmp.eq.s32.totalorder %s6466_s19, 0 }
   0x8   : > { %p134_p3 = scmp.eq.s32.totalorder %s5603_s20, 1  ;;  %p5604_p5 = scmp.ge.s32.totalorder %s6397_s18, 1 }
   0x9   : > { %p6475_p4 = por %p7538_p1, %p41_p0  ;;  %p141_p7 = scmp.lt.s32.totalorder %s6397_s18, 3 }
   0xa   : > { %p6480_p6 = por %p134_p3, %p41_p0  ;;  %s6399_s24 = smov [#allocation5]  }
   0xb   : > { %s7542_s21 = scalar_select %p6475_p4, 1, 0 }
   0xc   : > { %s7543_s22 = scalar_select %p6480_p6, 1, 0 }
   0xd   : > { %p6485_p8 = pnand %p5604_p5, %p141_p7  ;;  %s153_s25 = sshll.u32 %s6399_s24, 4  ;;  %s154_s25 = int_to_ptr.vmem [resolvable:$true] %s153_s25 }
   0xe   : > { %s6400_s27 = smov [#allocation7]   ;;  %s6260_s29 = scalar_lea.vmem %s154_s25, 6144 }
   0xf   : > { %s7544_s23 = scalar_select %p6485_p8, 1, 0 }
  0x10   : > { %p6078_p9 = pneg %p6485_p8  ;;  %s166_s28 = sshll.u32 %s6400_s27, 4  ;;  %s167_s28 = int_to_ptr.vmem [resolvable:$true] %s166_s28 }
  0x11   : > { %p6261_p13 = scmp.ne.s32.totalorder %s154_s25, %s6260_s29  ;;  %p6268_p5 = scmp.lt.s32.totalorder %s154_s25, %s154_s25 }
  0x12   : > { %p6494_p11 = pnand %p6078_p9, %p7538_p1  ;;  %p6269_p7 = scmp.lt.s32.totalorder %s6260_s29, %s6260_s29 }
  0x14   : > { %p6251_p12 = pneg %p6494_p11  ;;  %p6270_p10 = por %p6269_p7, %p6268_p5 }
  0x16   : > { %p6263_p0 = pnand %p6261_p13, %p6251_p12 }
  0x18   : > { %p6264_p3 = pneg %p6263_p0 }
  0x1a   : > { %p6271_p9 = pnand %p6270_p10, %p6264_p3 }
  0x1c   : > { %6274 = shalt.err (!%p6271_p9)
}
  0x1d   : > { %s6401_s30 = smov 384   ;;  %s6402_s5 = smov 24  }
  0x1e   : > { %6081 = dma.hbm_to_vmem [thread:$0]  (!%p6494_p11), %s7534_s1, 6144, %s154_s25, [#allocation6], %s6401_s30, %s6401_s30, %s6402_s5  }
  0x1f   : > { %s6286_s8 = scalar_lea.vmem %s167_s28, 2048  ;;  %p6294_p2 = scmp.lt.s32.totalorder %s167_s28, %s167_s28 }
  0x20   : > { %p6287_p1 = scmp.ne.s32.totalorder %s167_s28, %s6286_s8  ;;  %p6295_p6 = scmp.lt.s32.totalorder %s6286_s8, %s6286_s8 }
  0x22   : > { %p6289_p13 = pnand %p6287_p1, %p6251_p12  ;;  %p6296_p5 = por %p6295_p6, %p6294_p2 }
  0x24   : > { %p6290_p0 = pneg %p6289_p13 }
  0x26   : > { %p6297_p10 = pnand %p6296_p5, %p6290_p0 }
  0x28   : > { %6300 = shalt.err (!%p6297_p10)
}
  0x29   : > { %s6403_s9 = smov 128   ;;  %s6404_s10 = smov 8  }
  0x2a   : > { %6084 = dma.hbm_to_vmem [thread:$0]  (!%p6494_p11), %s7535_s2, 2048, %s167_s28, [#allocation6], %s6403_s9, %s6403_s9, %s6404_s10  }
  0x2b   : > { %s6520_s13 = sadd.s32 1, %s6397_s18   ;;  %s28_s20 = sadd.s32 1, %s6393_s17 }
  0x2c   : > { %s25_s14 = ssub.s32 %s6397_s18, %s6520_s13  ;;  %p35_p2 = scmp.ne.s32.totalorder %s6393_s17, %s6389_s16 }
  0x2d   : > { %p26_p1 = scmp.eq.s32.totalorder %s25_s14, 0  ;;  %p36_p6 = scmp.eq.s32.totalorder %s6397_s18, 0 }
  0x2e   : > { %p7546_p3 = scmp.eq.s32.totalorder %s6466_s19, 1  ;;  %p6095_p9 = scmp.lt.s32.totalorder %s6397_s18, 2 }
  0x2f   : > { %s6529_s24 = scalar_select %p26_p1, %s6393_s17, %s28_s20  }
  0x30   : > { %p37_p12 = por %p36_p6, %p35_p2  ;;  %p6533_p7 = por %p7546_p3, %p35_p2 }
  0x31   : > { %s183_s26 = sand.u32 1, %s6393_s17   ;;  %s5734_s28 = sshll.u32 %s6397_s18, 8 }
  0x32   : > { %s7547_s25 = scalar_select %p6533_p7, 1, 0 }
  0x33   : > { %s5608_s27 = sshll.u32 %s183_s26, 4  ;;  %s6543_s5 = scalar_lea.hbm %s7533_s0, %s5734_s28 }
  0x34   : > { %s187_s6 = scalar_lea.vmem [#allocation2], %s5608_s27  ;;  %p6547_p11 = pnand %p6095_p9, %p37_p12 }
  0x35   : > { %s194_s7 = sshll.u32 %s187_s6, 4  ;;  %s6551_s11 = scalar_lea.sflag [#allocation3], %s183_s26  ;;  %s6545_s7 = int_to_ptr.vmem [resolvable:$true] %s194_s7 }
  0x36   : > { %s6301_s12 = scalar_lea.hbm %s6543_s5, 256  ;;  %p6303_p0 = pneg %p6547_p11 }
  0x37   : > { %p6302_p13 = scmp.ne.s32.totalorder %s6543_s5, %s6301_s12  ;;  %s6306_s27 = scalar_lea.hbm %s7533_s0, 512 }
  0x38   : > { %p6307_p1 = scmp.lt.s32.totalorder %s6543_s5, %s7533_s0  ;;  %p6308_p2 = scmp.lt.s32.totalorder %s6306_s27, %s6301_s12 }
  0x39   : > { %p6304_p5 = pnand %p6303_p0, %p6302_p13 }
  0x3a   : > { %p6309_p6 = por %p6308_p2, %p6307_p1 }
  0x3b   : > { %p6305_p10 = pneg %p6304_p5 }
  0x3d   : > { %p6310_p12 = pnand %p6309_p6, %p6305_p10 }
  0x3f   : > { %6313 = shalt.err (!%p6310_p12)
}
  0x40   : > { %s6314_s26 = scalar_lea.vmem %s6545_s7, 256  ;;  %s6405_s30 = smov [#allocation2]  }
  0x41   : > { %p6315_p3 = scmp.ne.s32.totalorder %s6545_s7, %s6314_s26  ;;  %s6319_s6 = sshll.u32 %s6405_s30, 4  ;;  %s6320_s6 = int_to_ptr.vmem [resolvable:$false] %s6319_s6 }
  0x42   : > { %s6321_s14 = scalar_lea.vmem %s6320_s6, 512  ;;  %p6322_p5 = scmp.lt.s32.totalorder %s6545_s7, %s6320_s6 }
  0x43   : > { %p6317_p9 = pnand %p6315_p3, %p6303_p0  ;;  %p6323_p7 = scmp.lt.s32.totalorder %s6321_s14, %s6314_s26 }
  0x45   : > { %p6318_p13 = pneg %p6317_p9  ;;  %p6324_p4 = por %p6323_p7, %p6322_p5 }
  0x47   : > { %p6325_p8 = pnand %p6324_p4, %p6318_p13 }
  0x49   : > { %6328 = shalt.err (!%p6325_p8)
}
  0x4a   : > { %6088 = dma.hbm_to_vmem [thread:$0]  (!%p6547_p11), %s6543_s5, 256, %s6545_s7, %s6551_s11, %s6403_s9, %s6403_s9, %s6404_s10  }
  0x4b   : > { %p7549_p0 = scmp.ne.s32.totalorder %s7544_s23, 0 }
  0x4c   : > { %s6578_s12 = sand.u32 (!%p7549_p0), 1, %s6389_s16   ;;  %p7550_p4 = scmp.ne.s32.totalorder (!%p7549_p0), %s7542_s21, 0 }
  0x4d   : > { %206 = sbr.rel (%p7549_p0) target bundleno = 2128 (0x850), region = 36  ;;  %s5612_s20 = sshll.u32 (!%p7549_p0), %s6578_s12, 4 }
  0x4e   : > { %s209_s27 = scalar_lea.sflag (!%p7549_p0), [#allocation3], %s6578_s12  ;;  %s6584_s8 = scalar_lea.vmem (!%p7549_p0), [#allocation2], %s5612_s20 }
  0x52   : > { %6372 = dma.done.wait (%p7550_p4), %s209_s27, 256  }
  0x53   : > { %6374 = vsyncadd (%p7550_p4), %s209_s27, 4294967040  ;;  %p7551_p8 = scmp.eq.s32.totalorder %s6466_s19, 0 }
  0x55   : > { %6376 = dma.done.wait (%p7551_p8), [#allocation6], 8192   ;;  %p7552_p7 = pmov %p7551_p8 }
  0x56   : > { %v6406_v0 = vmov 0.0   ;;  %v295_v1 = vld [vmem:[#allocation5 + $0x170] sm:$0xff]  ;;  %v294_v2 = vld [vmem:[#allocation5 + $0x168] sm:$0xff]  ;;  %v292_v3 = vld [vmem:[#allocation5 + $0x158] sm:$0xff]  ;;  %s6407_s21 = smov 80   ;;  %s6408_s23 = smov 112   ;;  %v478_v58 = vlaneseq }
  0x57   : > { %6378 = vsyncadd (%p7552_p7), [#allocation6], 4294959104  ;;  %361 = vmatprep.mubr.f32.mxu0 %v6406_v0  ;;  %297 = vmatprep.subr.mxu0 %v295_v1  ;;  %v291_v4 = vld [vmem:[#allocation5 + $0x150] sm:$0xff]  ;;  %v289_v5 = vld [vmem:[#allocation5 + $0x140] sm:$0xff]  ;;  %s6409_s9 = smov 96   ;;  %s6410_s10 = smov 48  }
  0x58   : > { %298 = vmatpush1.msra.mxu0 %v294_v2  ;;  %v288_v6 = vld [vmem:[#allocation5 + $0x138] sm:$0xff]  ;;  %v286_v7 = vld [vmem:[#allocation5 + $0x128] sm:$0xff]  ;;  %v285_v8 = vld [vmem:[#allocation5 + $0x120] sm:$0xff]  ;;  %s6411_s5 = smov 64   ;;  %s6412_s7 = smov 16   ;;  %vm6414_vm0 = vmmov 0  }
  0x59   : > { %299 = vmatprep.subr.mxu0 %v292_v3  ;;  %v283_v9 = vld [vmem:[#allocation5 + $0x110] sm:$0xff]  ;;  %v282_v10 = vld [vmem:[#allocation5 + $0x108] sm:$0xff]  ;;  %v280_v11 = vld [vmem:[#allocation5 + $0xf8] sm:$0xff]  ;;  %s6413_s11 = smov 32   ;;  %v6415_v56 = vmov 1983009808  }
  0x5a   : > { %300 = vmatpush1.msra.mxu0 %v291_v4  ;;  %v279_v12 = vld [vmem:[#allocation5 + $0xf0] sm:$0xff]  ;;  %v277_v13 = vld [vmem:[#allocation5 + $0xe0] sm:$0xff]  ;;  %v276_v15 = vld [vmem:[#allocation5 + $0xd8] sm:$0xff]  ;;  %v476_v57 = vunpack.c.l.s4 %v6415_v56  ;;  %v6416_v59 = vmov 1934713408   ;;  %v479_v62 = vshrl.u32 %v478_v58, 7 }
  0x5b   : > { %301 = vmatprep.subr.mxu0 %v289_v5  ;;  %v6596_v14 = vld [vmem:[%s6584_s8] sm:$0xff]  ;;  %v296_v16 = vld [vmem:[#allocation5 + $0x178] sm:$0xff]  ;;  %v274_v18 = vld [vmem:[#allocation5 + $0xc8] sm:$0xff]  ;;  %v540_v60 = vunpack.c.l.s4 %v6416_v59  ;;  %vm1333_vm1 = vcmask 130048   ;;  %vm1942_vm2 = vcmask 64512   ;;  %vm2916_vm3 = vcmask 261120  }
  0x5c   : > { %302 = vmatpush1.msra.mxu0 %v288_v6  ;;  %v293_v17 = vld [vmem:[#allocation5 + $0x160] sm:$0xff]  ;;  %5868 = vmatprep.mubr.f32.mxu1 %v6596_v14  ;;  %v290_v20 = vld [vmem:[#allocation5 + $0x148] sm:$0xff]  ;;  %v271_v21 = vld [vmem:[#allocation5 + $0xb0] sm:$0xff]  ;;  %v477_v61 = vunpack.c.0.s8 %v476_v57  ;;  %vm2918_vm4 = vcmask 392192   ;;  %vm2920_vm5 = vcmask 523264   ;;  %vm2922_vm6 = vcmask 654336  }
  0x5d   : > { %303 = vmatprep.subr.mxu0 %v286_v7  ;;  %5836 = vmatprep.subr.mxu1 %v296_v16  ;;  %v273_v19 = vld [vmem:[#allocation5 + $0xc0] sm:$0xff]  ;;  %v270_v22 = vld [vmem:[#allocation5 + $0xa8] sm:$0xff]  ;;  %v287_v23 = vld [vmem:[#allocation5 + $0x130] sm:$0xff]  ;;  %v541_v2 = vunpack.c.0.s8 %v540_v60  ;;  %vm2924_vm7 = vcmask 785408   ;;  %vm2926_vm8 = vcmask 916480   ;;  %s244_s26 = scalar_lea.vmem [#allocation8], %s5612_s20 }
  0x5e   : > { %304 = vmatpush1.msra.mxu0 %v285_v8  ;;  %5837 = vmatpush3.msra.mxu1 %v296_v16  ;;  %v268_v24 = vld [vmem:[#allocation5 + $0x98] sm:$0xff]  ;;  %v267_v25 = vld [vmem:[#allocation5 + $0x90] sm:$0xff]  ;;  %v265_v27 = vld [vmem:[#allocation5 + $0x80] sm:$0xff]  ;;  %v6649_v3 = vsub.s32 %v477_v61, %v479_v62  ;;  %s5511_s30 = sshll.u32 %s244_s26, 4  ;;  %s5735_s6 = sshll.u32 %s6466_s19, 8  ;;  %s7485_s30 = int_to_ptr.vmem [resolvable:$true] %s5511_s30 }
  0x5f   : > { %305 = vmatprep.subr.mxu0 %v283_v9  ;;  %5838 = vmatprep.subr.mxu1 %v293_v17  ;;  %v284_v26 = vld [vmem:[#allocation5 + $0x118] sm:$0xff]  ;;  %v281_v29 = vld [vmem:[#allocation5 + $0x100] sm:$0xff]  ;;  %v262_v30 = vld [vmem:[#allocation5 + $0x68] sm:$0xff]  ;;  %s6329_s20 = scalar_lea.vmem %s7485_s30, 256  ;;  %p7553_p10 = scmp.ne.s32.totalorder %s7547_s25, 0 }
  0x60   : > { %306 = vmatpush1.msra.mxu0 %v282_v10  ;;  %5839 = vmatpush3.msra.mxu1 %v293_v17  ;;  %v264_v28 = vld [vmem:[#allocation5 + $0x78] sm:$0xff]  ;;  %v261_v31 = vld [vmem:[#allocation5 + $0x60] sm:$0xff]  ;;  %v278_v32 = vld [vmem:[#allocation5 + $0xe8] sm:$0xff]  ;;  %v6651_v10 = vsub.s32 %v541_v2, %v479_v62  ;;  %p6330_p11 = scmp.ne.s32.totalorder %s7485_s30, %s6329_s20  ;;  %s6417_s19 = smov [#allocation8]  }
  0x61   : > { %307 = vmatprep.subr.mxu0 %v280_v11  ;;  %5840 = vmatprep.subr.mxu1 %v290_v20  ;;  %v259_v33 = vld [vmem:[#allocation5 + $0x50] sm:$0xff]  ;;  %v258_v34 = vld [vmem:[#allocation5 + $0x48] sm:$0xff]  ;;  %v256_v36 = vld [vmem:[#allocation5 + $0x38] sm:$0xff] }
  0x62   : > { %308 = vmatpush1.msra.mxu0 %v279_v12  ;;  %5841 = vmatpush3.msra.mxu1 %v290_v20  ;;  %v275_v35 = vld [vmem:[#allocation5 + $0xd0] sm:$0xff]  ;;  %v272_v38 = vld [vmem:[#allocation5 + $0xb8] sm:$0xff]  ;;  %v253_v39 = vld [vmem:[#allocation5 + $0x20] sm:$0xff]  ;;  %p6331_p1 = pnand %p6330_p11, %p7553_p10 }
  0x63   : > { %309 = vmatprep.subr.mxu0 %v277_v13  ;;  %5842 = vmatprep.subr.mxu1 %v287_v23  ;;  %v255_v37 = vld [vmem:[#allocation5 + $0x30] sm:$0xff]  ;;  %v252_v40 = vld [vmem:[#allocation5 + $0x18] sm:$0xff]  ;;  %v269_v41 = vld [vmem:[#allocation5 + $0xa0] sm:$0xff] }
  0x64   : > { %310 = vmatpush1.msra.mxu0 %v276_v15  ;;  %5843 = vmatpush3.msra.mxu1 %v287_v23  ;;  %v250_v42 = vld [vmem:[#allocation5 + $0x8] sm:$0xff]  ;;  %v249_v43 = vld [vmem:[#allocation5] sm:$0xff]  ;;  %v263_v45 = vld [vmem:[#allocation5 + $0x70] sm:$0xff]  ;;  %p6332_p2 = pneg %p6331_p1 }
  0x65   : > { %311 = vmatprep.subr.mxu0 %v274_v18  ;;  %5844 = vmatprep.subr.mxu1 %v284_v26  ;;  %v266_v44 = vld [vmem:[#allocation5 + $0x88] sm:$0xff]  ;;  %v260_v46 = vld [vmem:[#allocation5 + $0x58] sm:$0xff]  ;;  %v257_v47 = vld [vmem:[#allocation5 + $0x40] sm:$0xff] }
  0x66   : > { %312 = vmatpush1.msra.mxu0 %v273_v19  ;;  %5845 = vmatpush3.msra.mxu1 %v284_v26  ;;  %v248_v48 = vld [vmem:[%s6584_s8 + $0x8] sm:$0xff]  ;;  %v251_v50 = vld [vmem:[#allocation5 + $0x10] sm:$0xff]  ;;  %s7490_s8 = scalar_lea.hbm %s7537_s4, %s5735_s6 }
  0x67   : > { %313 = vmatprep.subr.mxu0 %v271_v21  ;;  %5846 = vmatprep.subr.mxu1 %v281_v29  ;;  %v254_v49 = vld [vmem:[#allocation5 + $0x28] sm:$0xff] }
  0x68   : > { %314 = vmatpush1.msra.mxu0 %v270_v22  ;;  %5847 = vmatpush3.msra.mxu1 %v281_v29 }
  0x69   : > { %315 = vmatprep.subr.mxu0 %v268_v24  ;;  %5848 = vmatprep.subr.mxu1 %v278_v32 }
  0x6a   : > { %316 = vmatpush1.msra.mxu0 %v267_v25  ;;  %5849 = vmatpush3.msra.mxu1 %v278_v32 }
  0x6b   : > { %317 = vmatprep.subr.mxu0 %v265_v27  ;;  %5850 = vmatprep.subr.mxu1 %v275_v35 }
  0x6c   : > { %318 = vmatpush1.msra.mxu0 %v264_v28  ;;  %5851 = vmatpush3.msra.mxu1 %v275_v35 }
  0x6d   : > { %319 = vmatprep.subr.mxu0 %v262_v30  ;;  %5852 = vmatprep.subr.mxu1 %v272_v38 }
  0x6e   : > { %320 = vmatpush1.msra.mxu0 %v261_v31  ;;  %5853 = vmatpush3.msra.mxu1 %v272_v38 }
  0x6f   : > { %321 = vmatprep.subr.mxu0 %v259_v33  ;;  %5854 = vmatprep.subr.mxu1 %v269_v41 }
  0x70   : > { %322 = vmatpush1.msra.mxu0 %v258_v34  ;;  %5855 = vmatpush3.msra.mxu1 %v269_v41 }
  0x71   : > { %323 = vmatprep.subr.mxu0 %v256_v36  ;;  %5856 = vmatprep.subr.mxu1 %v266_v44 }
  0x72   : > { %324 = vmatpush1.msra.mxu0 %v255_v37  ;;  %5857 = vmatpush3.msra.mxu1 %v266_v44 }
  0x73   : > { %325 = vmatprep.subr.mxu0 %v253_v39  ;;  %5858 = vmatprep.subr.mxu1 %v263_v45 }
  0x74   : > { %326 = vmatpush1.msra.mxu0 %v252_v40  ;;  %5859 = vmatpush3.msra.mxu1 %v263_v45 }
  0x75   : > { %327 = vmatprep.subr.mxu0 %v250_v42  ;;  %5860 = vmatprep.subr.mxu1 %v260_v46 }
  0x76   : > { %328 = vmatpush1.msra.mxu0 %v249_v43  ;;  %5861 = vmatpush3.msra.mxu1 %v260_v46 }
  0x77   : > { %362 = vmatmul.mubr.f32.vlgmr.msra.gmra.mxu0 %v6596_v14  ;;  %5871 = vmatprep.subr.mxu0 %v6406_v0 }
  0x78   : > { %367 = vmatprep.mubr.f32.mxu0 %v6406_v0  ;;  %5862 = vmatprep.subr.mxu1 %v257_v47 }
  0x79   : > { %5863 = vmatpush3.msra.mxu1 %v257_v47 }
  0x7a   : > { %5864 = vmatprep.subr.mxu1 %v254_v49 }
  0x7b   : > { %368 = vmatmul.mubr.f32.gmra.mxu0 %v248_v48  ;;  %5865 = vmatpush3.msra.mxu1 %v254_v49 }
  0x7c   : > { %5866 = vmatprep.subr.mxu1 %v251_v50  ;;  %5873 = vmatprep.mubr.msk.f32.mxu0 %vm6414_vm0, %v6406_v0 }
  0x7d   : > { %5867 = vmatpush3.msra.mxu1 %v251_v50 }
  0x7e   : > { %5869 = vmatmul.mubr.f32.vlgmr.msra.gmra.mxu1 %v248_v48  ;;  %5901 = vmatprep.subr.mxu1 %v6406_v0 }
  0x7f   : > { %5903 = vmatprep.mubr.msk.f32.mxu1 %vm6414_vm0, %v6406_v0 }
 0x137   : > { %v363_v51 = vpop.f32.mrf.mxu0 }
 0x138   : > { %v6606_v53 = vmul.f32 4.0, %v363_v51 }
 0x139   : > { %v365_v52 = vpop.f32.mrf.mxu0 }
 0x13a   : > { %752 = vrot.lane.b32.xlu1 %v365_v52, %s6407_s21  ;;  %746 = vrot.lane.b32.xlu0 %v365_v52, %s6408_s23 }
 0x13e   : > { %452 = vrot.lane.b32.xlu1 %v6606_v53, %s6408_s23  ;;  %749 = vrot.lane.b32.xlu0 %v365_v52, %s6409_s9  ;;  %v6631_v54 = vpop.f32.mrf.mxu1 }
 0x140   : > { %v6633_v55 = vpop.f32.mrf.mxu1 }
 0x142   : > { %458 = vrot.lane.b32.xlu1 %v6606_v53, %s6407_s21  ;;  %455 = vrot.lane.b32.xlu0 %v6606_v53, %s6409_s9 }
 0x146   : > { %758 = vrot.lane.b32.xlu1 %v365_v52, %s6410_s10  ;;  %755 = vrot.lane.b32.xlu0 %v365_v52, %s6411_s5 }
 0x14a   : > { %764 = vrot.lane.b32.xlu1 %v365_v52, %s6412_s7  ;;  %761 = vrot.lane.b32.xlu0 %v365_v52, %s6413_s11 }
 0x14e   : > { %464 = vrot.lane.b32.xlu1 %v6606_v53, %s6410_s10  ;;  %461 = vrot.lane.b32.xlu0 %v6606_v53, %s6411_s5 }
 0x152   : > { %470 = vrot.lane.b32.xlu1 %v6606_v53, %s6412_s7  ;;  %467 = vrot.lane.b32.xlu0 %v6606_v53, %s6413_s11 }
 0x156   : > { %1040 = vrot.lane.b32.xlu1 %v6633_v55, %s6408_s23  ;;  %1043 = vrot.lane.b32.xlu0 %v6633_v55, %s6409_s9 }
 0x15a   : > { %1046 = vrot.lane.b32.xlu1 %v6633_v55, %s6407_s21  ;;  %1049 = vrot.lane.b32.xlu0 %v6633_v55, %s6411_s5 }
 0x15e   : > { %1052 = vrot.lane.b32.xlu1 %v6633_v55, %s6410_s10  ;;  %1058 = vrot.lane.b32.xlu0 %v6633_v55, %s6412_s7 }
 0x162   : > { %1055 = vrot.lane.b32.xlu1 %v6633_v55, %s6413_s11 }
 0x1ac   : > { %v753_v63 = vpop.permute.xlu1 %752  ;;  %v747_v1 = vpop.permute.xlu0 %746 }
 0x1ad   : > { %v783_v4 = vcombine.low %v747_v1, %v753_v63  ;;  %v784_v5 = vcombine.high %v747_v1, %v753_v63 }
 0x1af   : > { %v791_v11 = vrot.slane %v783_v4, %v6649_v3  ;;  %v798_v12 = vrot.slane %v784_v5, %v6649_v3 }
 0x1b0   : > { %v453_v6 = vpop.permute.xlu1 %452  ;;  %v750_v7 = vpop.permute.xlu0 %749 }
 0x1b1   : > { %v767_v8 = vcombine.low %v365_v52, %v750_v7  ;;  %v768_v9 = vcombine.high %v365_v52, %v750_v7 }
 0x1b3   : > { %v775_v13 = vrot.slane %v767_v8, %v6649_v3  ;;  %v782_v14 = vrot.slane %v768_v9, %v6649_v3 }
 0x1b4   : > { %v459_v15 = vpop.permute.xlu1 %458  ;;  %v456_v16 = vpop.permute.xlu0 %455 }
 0x1b5   : > { %v831_v17 = vcombine.low %v775_v13, %v791_v11  ;;  %v832_v18 = vcombine.high %v775_v13, %v791_v11  ;;  %v847_v19 = vcombine.low %v782_v14, %v798_v12  ;;  %v848_v20 = vcombine.high %v782_v14, %v798_v12 }
 0x1b6   : > { %v489_v21 = vcombine.low %v453_v6, %v459_v15  ;;  %v490_v22 = vcombine.high %v453_v6, %v459_v15  ;;  %v473_v23 = vcombine.low %v6606_v53, %v456_v16  ;;  %v474_v24 = vcombine.high %v6606_v53, %v456_v16 }
 0x1b7   : > { %v839_v25 = vrot.slane %v831_v17, %v6651_v10  ;;  %v846_v26 = vrot.slane %v832_v18, %v6651_v10  ;;  %v855_v27 = vrot.slane %v847_v19, %v6651_v10  ;;  %v862_v28 = vrot.slane %v848_v20, %v6651_v10 }
 0x1b8   : > { %v497_v29 = vrot.slane %v489_v21, %v6649_v3  ;;  %v504_v30 = vrot.slane %v490_v22, %v6649_v3  ;;  %v481_v31 = vrot.slane %v473_v23, %v6649_v3  ;;  %v488_v32 = vrot.slane %v474_v24, %v6649_v3  ;;  %v759_v33 = vpop.permute.xlu1 %758  ;;  %v756_v34 = vpop.permute.xlu0 %755 }
 0x1b9   : > { %v5624_v35 = vcombine.low %v839_v25, %v846_v26  ;;  %v5626_v36 = vcombine.high %v839_v25, %v846_v26  ;;  %v5628_v37 = vcombine.low %v855_v27, %v862_v28  ;;  %v5630_v38 = vcombine.high %v855_v27, %v862_v28 }
 0x1ba   : > { %v537_v39 = vcombine.low %v481_v31, %v497_v29  ;;  %v538_v40 = vcombine.high %v481_v31, %v497_v29  ;;  %v553_v41 = vcombine.low %v488_v32, %v504_v30  ;;  %v554_v42 = vcombine.high %v488_v32, %v504_v30 }
 0x1bb   : > { %v6668_v43 = vrot.slane %v5624_v35, %v6649_v3  ;;  %v6671_v44 = vrot.slane %v5626_v36, %v6649_v3  ;;  %v6674_v45 = vrot.slane %v5628_v37, %v6649_v3  ;;  %v6677_v46 = vrot.slane %v5630_v38, %v6649_v3 }
 0x1bc   : > { %v545_v47 = vrot.slane %v537_v39, %v6651_v10  ;;  %v552_v48 = vrot.slane %v538_v40, %v6651_v10  ;;  %v561_v49 = vrot.slane %v553_v41, %v6651_v10  ;;  %v568_v50 = vrot.slane %v554_v42, %v6651_v10  ;;  %v765_v51 = vpop.permute.xlu1 %764  ;;  %v762_v52 = vpop.permute.xlu0 %761 }
 0x1bd   : > { %v967_v53 = vcombine.low %v6668_v43, %v6671_v44  ;;  %v999_v56 = vcombine.low %v6674_v45, %v6677_v46  ;;  %v815_v61 = vcombine.low %v759_v33, %v765_v51  ;;  %v816_v62 = vcombine.high %v759_v33, %v765_v51 }
 0x1be   : > { %v5616_v57 = vcombine.low %v545_v47, %v552_v48  ;;  %v5618_v58 = vcombine.high %v545_v47, %v552_v48  ;;  %v5620_v59 = vcombine.low %v561_v49, %v568_v50  ;;  %v5622_v60 = vcombine.high %v561_v49, %v568_v50 }
 0x1bf   : > { %v799_v63 = vcombine.low %v756_v34, %v762_v52  ;;  %v800_v1 = vcombine.high %v756_v34, %v762_v52  ;;  %v823_v9 = vrot.slane %v815_v61, %v6649_v3  ;;  %v830_v11 = vrot.slane %v816_v62, %v6649_v3 }
 0x1c0   : > { %v6688_v2 = vrot.slane %v5616_v57, %v6649_v3  ;;  %v6691_v4 = vrot.slane %v5618_v58, %v6649_v3  ;;  %v6694_v5 = vrot.slane %v5620_v59, %v6649_v3  ;;  %v6697_v6 = vrot.slane %v5622_v60, %v6649_v3  ;;  %v465_v7 = vpop.permute.xlu1 %464  ;;  %v462_v8 = vpop.permute.xlu0 %461 }
 0x1c1   : > { %v807_v12 = vrot.slane %v799_v63, %v6649_v3  ;;  %v814_v13 = vrot.slane %v800_v1, %v6649_v3  ;;  %v968_v14 = vcombine.high %v6668_v43, %v6671_v44  ;;  %v1000_v15 = vcombine.high %v6674_v45, %v6677_v46 }
 0x1c2   : > { %v673_v16 = vcombine.low %v6688_v2, %v6691_v4  ;;  %v705_v17 = vcombine.low %v6694_v5, %v6697_v6  ;;  %v975_v24 = vrot.slane %v967_v53, %v6651_v10  ;;  %v1007_v25 = vrot.slane %v999_v56, %v6651_v10 }
 0x1c3   : > { %v863_v18 = vcombine.low %v807_v12, %v823_v9  ;;  %v864_v19 = vcombine.high %v807_v12, %v823_v9  ;;  %v879_v20 = vcombine.low %v814_v13, %v830_v11  ;;  %v880_v21 = vcombine.high %v814_v13, %v830_v11 }
 0x1c4   : > { %v6712_v22 = vrot.slane %v673_v16, %v6651_v10  ;;  %v6715_v23 = vrot.slane %v705_v17, %v6651_v10  ;;  %v471_v26 = vpop.permute.xlu1 %470  ;;  %v468_v27 = vpop.permute.xlu0 %467  ;;  %v1031_v32 = vcombine.low %v975_v24, %v1007_v25  ;;  %v674_v52 = vcombine.high %v6688_v2, %v6691_v4 }
 0x1c5   : > { %v871_v28 = vrot.slane %v863_v18, %v6651_v10  ;;  %v878_v29 = vrot.slane %v864_v19, %v6651_v10  ;;  %v887_v30 = vrot.slane %v879_v20, %v6651_v10  ;;  %v894_v31 = vrot.slane %v880_v21, %v6651_v10 }
 0x1c6   : > { %v521_v33 = vcombine.low %v465_v7, %v471_v26  ;;  %v522_v34 = vcombine.high %v465_v7, %v471_v26  ;;  %v505_v35 = vcombine.low %v462_v8, %v468_v27  ;;  %5872 = vmatpush3.xpose.msk.msra.mxu0 %vm1333_vm1, %v1031_v32  ;;  %v506_v42 = vcombine.high %v462_v8, %v468_v27 }
 0x1c7   : > { %v5625_v36 = vcombine.low %v871_v28, %v878_v29  ;;  %v5627_v37 = vcombine.high %v871_v28, %v878_v29  ;;  %v5629_v38 = vcombine.low %v887_v30, %v894_v31  ;;  %v5631_v39 = vcombine.high %v887_v30, %v894_v31  ;;  %5876 = vmatprep.subr.mxu0 %v6406_v0 }
 0x1c8   : > { %v529_v40 = vrot.slane %v521_v33, %v6649_v3  ;;  %v536_v41 = vrot.slane %v522_v34, %v6649_v3  ;;  %v513_v43 = vrot.slane %v505_v35, %v6649_v3  ;;  %v520_v48 = vrot.slane %v506_v42, %v6649_v3 }
 0x1c9   : > { %v918_v44 = vrot.slane %v5625_v36, %v6649_v3  ;;  %v934_v45 = vrot.slane %v5627_v37, %v6649_v3  ;;  %v950_v46 = vrot.slane %v5629_v38, %v6649_v3  ;;  %v966_v47 = vrot.slane %v5631_v39, %v6649_v3  ;;  %v1041_v39 = vpop.permute.xlu1 %1040 }
 0x1ca   : > { %v569_v49 = vcombine.low %v513_v43, %v529_v40  ;;  %v570_v50 = vcombine.high %v513_v43, %v529_v40  ;;  %v737_v51 = vcombine.low %v6712_v22, %v6715_v23  ;;  %v706_v53 = vcombine.high %v6694_v5, %v6697_v6  ;;  %v1044_v40 = vpop.permute.xlu0 %1043 }
 0x1cb   : > { %v984_v56 = vcombine.high %v918_v44, %v934_v45  ;;  %v585_v59 = vcombine.low %v520_v48, %v536_v41  ;;  %v586_v60 = vcombine.high %v520_v48, %v536_v41  ;;  %v1016_v61 = vcombine.high %v950_v46, %v966_v47 }
 0x1cc   : > { %v577_v57 = vrot.slane %v569_v49, %v6651_v10  ;;  %v584_v58 = vrot.slane %v570_v50, %v6651_v10  ;;  %5874 = vmatmul.mubr.msk.f32.vlgmr.msra.gmra.mxu0 %vm1333_vm1, %v737_v51  ;;  %v1032_v62 = vcombine.high %v975_v24, %v1007_v25  ;;  %v982_v63 = vrot.slane %v968_v14, %v6651_v10 }
 0x1cd   : > { %5878 = vmatprep.mubr.msk.f32.mxu0 %vm6414_vm0, %v6406_v0  ;;  %v1014_v1 = vrot.slane %v1000_v15, %v6651_v10  ;;  %v593_v2 = vrot.slane %v585_v59, %v6651_v10  ;;  %v600_v4 = vrot.slane %v586_v60, %v6651_v10  ;;  %v983_v7 = vcombine.low %v918_v44, %v934_v45  ;;  %v1047_v45 = vpop.permute.xlu1 %1046 }
 0x1ce   : > { %v5617_v5 = vcombine.low %v577_v57, %v584_v58  ;;  %v5619_v6 = vcombine.high %v577_v57, %v584_v58  ;;  %5877 = vmatpush3.xpose.msk.msra.mxu0 %vm1333_vm1, %v1032_v62  ;;  %v738_v8 = vcombine.high %v6712_v22, %v6715_v23  ;;  %v688_v9 = vrot.slane %v674_v52, %v6651_v10 }
 0x1cf   : > { %v720_v11 = vrot.slane %v706_v53, %v6651_v10  ;;  %v5621_v14 = vcombine.low %v593_v2, %v600_v4  ;;  %v5623_v15 = vcombine.high %v593_v2, %v600_v4  ;;  %5881 = vmatprep.subr.mxu0 %v6406_v0  ;;  %v1015_v16 = vcombine.low %v950_v46, %v966_v47 }
 0x1d0   : > { %v624_v12 = vrot.slane %v5617_v5, %v6649_v3  ;;  %v640_v13 = vrot.slane %v5619_v6, %v6649_v3  ;;  %v1033_v17 = vcombine.low %v982_v63, %v1014_v1  ;;  %v998_v18 = vrot.slane %v984_v56, %v6651_v10 }
 0x1d1   : > { %v1030_v19 = vrot.slane %v1016_v61, %v6651_v10  ;;  %v656_v20 = vrot.slane %v5621_v14, %v6649_v3  ;;  %v672_v21 = vrot.slane %v5623_v15, %v6649_v3  ;;  %5879 = vmatmul.mubr.msk.f32.vlgmr.msra.gmra.mxu0 %vm1333_vm1, %v738_v8  ;;  %v739_v27 = vcombine.low %v688_v9, %v720_v11 }
 0x1d2   : > { %v689_v22 = vcombine.low %v624_v12, %v640_v13  ;;  %v690_v23 = vcombine.high %v624_v12, %v640_v13  ;;  %5882 = vmatpush3.xpose.msk.msra.mxu0 %vm1333_vm1, %v1033_v17  ;;  %5883 = vmatprep.mubr.msk.f32.mxu0 %vm6414_vm0, %v6406_v0  ;;  %v1034_v29 = vcombine.high %v982_v63, %v1014_v1 }
 0x1d3   : > { %v1037_v24 = vcombine.low %v998_v18, %v1030_v19  ;;  %v721_v25 = vcombine.low %v656_v20, %v672_v21  ;;  %v722_v26 = vcombine.high %v656_v20, %v672_v21  ;;  %5886 = vmatprep.subr.mxu0 %v6406_v0  ;;  %v991_v30 = vrot.slane %v983_v7, %v6651_v10 }
 0x1d4   : > { %v704_v28 = vrot.slane %v690_v23, %v6651_v10  ;;  %v1023_v31 = vrot.slane %v1015_v16, %v6651_v10  ;;  %v697_v32 = vrot.slane %v689_v22, %v6651_v10  ;;  %v740_v35 = vcombine.high %v688_v9, %v720_v11  ;;  %v1053_v22 = vpop.permute.xlu1 %1052  ;;  %v1050_v23 = vpop.permute.xlu0 %1049 }
 0x1d5   : > { %5902 = vmatpush3.xpose.msk.msra.mxu1 %vm1333_vm1, %v1037_v24  ;;  %5884 = vmatmul.mubr.msk.f32.vlgmr.msra.gmra.mxu0 %vm1333_vm1, %v739_v27  ;;  %v729_v33 = vrot.slane %v721_v25, %v6651_v10  ;;  %v736_v34 = vrot.slane %v722_v26, %v6651_v10  ;;  %v1061_v41 = vcombine.low %v6633_v55, %v1044_v40 }
 0x1d6   : > { %5911 = vmatprep.subr.mxu1 %v6406_v0  ;;  %5887 = vmatpush3.xpose.msk.msra.mxu0 %vm1333_vm1, %v1034_v29  ;;  %v1035_v37 = vcombine.low %v991_v30, %v1023_v31  ;;  %v1062_v42 = vcombine.high %v6633_v55, %v1044_v40  ;;  %v1036_v43 = vcombine.high %v991_v30, %v1023_v31 }
 0x1d7   : > { %5888 = vmatprep.mubr.msk.f32.mxu0 %vm6414_vm0, %v6406_v0  ;;  %5891 = vmatprep.subr.mxu0 %v6406_v0  ;;  %v743_v36 = vcombine.low %v704_v28, %v736_v34  ;;  %v741_v38 = vcombine.low %v697_v32, %v729_v33  ;;  %v742_v44 = vcombine.high %v697_v32, %v729_v33 }
 0x1d8   : > { %v1077_v46 = vcombine.low %v1041_v39, %v1047_v45  ;;  %v1078_v47 = vcombine.high %v1041_v39, %v1047_v45  ;;  %v1069_v48 = vrot.slane %v1061_v41, %v6649_v3  ;;  %v1076_v55 = vrot.slane %v1062_v42, %v6649_v3  ;;  %v1056_v24 = vpop.permute.xlu1 %1055  ;;  %v1059_v25 = vpop.permute.xlu0 %1058 }
 0x1d9   : > { %5889 = vmatmul.mubr.msk.f32.vlgmr.msra.gmra.mxu0 %vm1333_vm1, %v740_v35  ;;  %5904 = vmatmul.mubr.msk.f32.vlgmr.msra.gmra.mxu1 %vm1333_vm1, %v743_v36  ;;  %v1038_v49 = vcombine.high %v998_v18, %v1030_v19  ;;  %v744_v52 = vcombine.high %v704_v28, %v736_v34  ;;  %v1093_v26 = vcombine.low %v1050_v23, %v1056_v24 }
 0x1da   : > { %5892 = vmatpush3.xpose.msk.msra.mxu0 %vm1333_vm1, %v1035_v37  ;;  %5893 = vmatprep.mubr.msk.f32.mxu0 %vm6414_vm0, %v6406_v0  ;;  %v1085_v50 = vrot.slane %v1077_v46, %v6649_v3  ;;  %v1092_v51 = vrot.slane %v1078_v47, %v6649_v3  ;;  %v1094_v27 = vcombine.high %v1050_v23, %v1056_v24 }
 0x1db   : > { %5896 = vmatprep.subr.mxu0 %v6406_v0  ;;  %5913 = vmatprep.mubr.msk.f32.mxu1 %vm6414_vm0, %v6406_v0  ;;  %v1109_v28 = vcombine.low %v1053_v22, %v1059_v25  ;;  %v1110_v29 = vcombine.high %v1053_v22, %v1059_v25  ;;  %v1101_v30 = vrot.slane %v1093_v26, %v6649_v3 }
 0x1dc   : > { %v1125_v53 = vcombine.low %v1069_v48, %v1085_v50  ;;  %v1126_v56 = vcombine.high %v1069_v48, %v1085_v50  ;;  %v1141_v57 = vcombine.low %v1076_v55, %v1092_v51  ;;  %v1142_v58 = vcombine.high %v1076_v55, %v1092_v51 }
 0x1dd   : > { %5894 = vmatmul.mubr.msk.f32.vlgmr.msra.gmra.mxu0 %vm1333_vm1, %v741_v38  ;;  %v1108_v31 = vrot.slane %v1094_v27, %v6649_v3  ;;  %v1117_v32 = vrot.slane %v1109_v28, %v6649_v3  ;;  %v1124_v33 = vrot.slane %v1110_v29, %v6649_v3 }
 0x1de   : > { %5897 = vmatpush3.xpose.msk.msra.mxu0 %vm1333_vm1, %v1036_v43  ;;  %5898 = vmatprep.mubr.msk.f32.mxu0 %vm6414_vm0, %v6406_v0  ;;  %v1133_v59 = vrot.slane %v1125_v53, %v6651_v10  ;;  %v1140_v60 = vrot.slane %v1126_v56, %v6651_v10  ;;  %v1149_v61 = vrot.slane %v1141_v57, %v6651_v10 }
 0x1df   : > { %5906 = vmatprep.subr.mxu0 %v6406_v0  ;;  %v1156_v62 = vrot.slane %v1142_v58, %v6651_v10  ;;  %v1157_v34 = vcombine.low %v1101_v30, %v1117_v32  ;;  %v1158_v35 = vcombine.high %v1101_v30, %v1117_v32  ;;  %v1173_v36 = vcombine.low %v1108_v31, %v1124_v33 }
 0x1e0   : > { %v5632_v63 = vcombine.low %v1133_v59, %v1140_v60  ;;  %v5634_v1 = vcombine.high %v1133_v59, %v1140_v60  ;;  %v1174_v37 = vcombine.high %v1108_v31, %v1124_v33 }
 0x1e1   : > { %5899 = vmatmul.mubr.msk.f32.vlgmr.msra.gmra.mxu0 %vm1333_vm1, %v742_v44  ;;  %v5636_v2 = vcombine.low %v1149_v61, %v1156_v62  ;;  %v5638_v4 = vcombine.high %v1149_v61, %v1156_v62  ;;  %v1165_v38 = vrot.slane %v1157_v34, %v6651_v10  ;;  %v1172_v39 = vrot.slane %v1158_v35, %v6651_v10 }
 0x1e2   : > { %5907 = vmatpush3.xpose.msk.msra.mxu0 %vm1333_vm1, %v1038_v49  ;;  %5908 = vmatprep.mubr.msk.f32.mxu0 %vm6414_vm0, %v6406_v0  ;;  %v1205_v5 = vrot.slane %v5632_v63, %v6649_v3  ;;  %v1221_v6 = vrot.slane %v5634_v1, %v6649_v3  ;;  %v1181_v40 = vrot.slane %v1173_v36, %v6651_v10  ;;  %v369_v63 = vpop.f32.mrf.mxu0 }
 0x1e3   : > { %5916 = vmatprep.subr.mxu0 %v6406_v0  ;;  %v1237_v7 = vrot.slane %v5636_v2, %v6649_v3  ;;  %v1253_v8 = vrot.slane %v5638_v4, %v6649_v3  ;;  %v1188_v41 = vrot.slane %v1174_v37, %v6651_v10  ;;  %v5633_v42 = vcombine.low %v1165_v38, %v1172_v39 }
 0x1e4   : > { %v1261_v9 = vcombine.low %v1205_v5, %v1221_v6  ;;  %v1262_v16 = vcombine.high %v1205_v5, %v1221_v6  ;;  %v5635_v43 = vcombine.high %v1165_v38, %v1172_v39  ;;  %v6859_v1 = vpop.f32.mrf.mxu0  ;;  %v6885_v32 = vmul.f32 4.0, %v369_v63 }
 0x1e5   : > { %5909 = vmatmul.mubr.msk.f32.vlgmr.msra.gmra.mxu0 %vm1333_vm1, %v744_v52  ;;  %v1293_v11 = vcombine.low %v1237_v7, %v1253_v8  ;;  %v1294_v17 = vcombine.high %v1237_v7, %v1253_v8  ;;  %v5637_v44 = vcombine.low %v1181_v40, %v1188_v41  ;;  %v5639_v45 = vcombine.high %v1181_v40, %v1188_v41 }
 0x1e6   : > { %5918 = vmatprep.mubr.msk.f32.mxu0 %vm6414_vm0, %v6406_v0  ;;  %v1269_v12 = vrot.slane %v1261_v9, %v6651_v10  ;;  %v6818_v18 = vrot.slane %v1262_v16, %v6651_v10  ;;  %v1212_v46 = vrot.slane %v5633_v42, %v6649_v3  ;;  %v1228_v47 = vrot.slane %v5635_v43, %v6649_v3 }
 0x1e7   : > { %v1301_v13 = vrot.slane %v1293_v11, %v6651_v10  ;;  %v6821_v19 = vrot.slane %v1294_v17, %v6651_v10  ;;  %v1244_v48 = vrot.slane %v5637_v44, %v6649_v3  ;;  %v1260_v55 = vrot.slane %v5639_v45, %v6649_v3 }
 0x1e8   : > { %v1277_v49 = vcombine.low %v1212_v46, %v1228_v47  ;;  %v1278_v51 = vcombine.high %v1212_v46, %v1228_v47 }
 0x1e9   : > { %v1325_v14 = vcombine.low %v1269_v12, %v1301_v13  ;;  %v1326_v15 = vcombine.high %v1269_v12, %v1301_v13  ;;  %v1327_v20 = vcombine.low %v6818_v18, %v6821_v19  ;;  %v1328_v21 = vcombine.high %v6818_v18, %v6821_v19 }
 0x1ea   : > { %v1309_v50 = vcombine.low %v1244_v48, %v1260_v55  ;;  %v1310_v52 = vcombine.high %v1244_v48, %v1260_v55  ;;  %v6840_v53 = vrot.slane %v1277_v49, %v6651_v10  ;;  %v6846_v57 = vrot.slane %v1278_v51, %v6651_v10 }
 0x1eb   : > { %5912 = vmatpush3.msra.mxu1 %v1325_v14  ;;  %5917 = vmatpush3.msra.mxu0 %v1326_v15 }
 0x1ec   : > { %5921 = vmatprep.subr.mxu1 %v6406_v0  ;;  %5926 = vmatprep.subr.mxu0 %v6406_v0  ;;  %v6843_v56 = vrot.slane %v1309_v50, %v6651_v10  ;;  %v6849_v58 = vrot.slane %v1310_v52, %v6651_v10 }
 0x1ee   : > { %v1329_v59 = vcombine.low %v6840_v53, %v6843_v56  ;;  %v1330_v60 = vcombine.high %v6840_v53, %v6843_v56  ;;  %v1332_v61 = vcombine.high %v6846_v57, %v6849_v58  ;;  %v1331_v62 = vcombine.low %v6846_v57, %v6849_v58 }
 0x28c   : > { %v1406_v2 = vpop.f32.mrf.mxu0 }
 0x28d   : > { %v1943_v4 = vsel %vm1942_vm2, %v1406_v2, -inf }
 0x28e   : > { %1944 = vmax.xlane.f32.xlu0 %v1943_v4  ;;  %v5875_v5 = vpop.f32.mrf.mxu0 }
 0x291   : > { %v1482_v6 = vpop.f32.mrf.mxu0 }
 0x292   : > { %v1946_v17 = vsel %vm1942_vm2, %v1482_v6, -inf }
 0x293   : > { %v5880_v7 = vpop.f32.mrf.mxu0 }
 0x295   : > { %v6862_v8 = vpop.f32.mrf.mxu0 }
 0x296   : > { %v1949_v27 = vsel %vm1942_vm2, %v6862_v8, -inf }
 0x297   : > { %v5885_v9 = vpop.f32.mrf.mxu0 }
 0x299   : > { %v6864_v11 = vpop.f32.mrf.mxu0  ;;  %v1862_v12 = vpop.f32.mrf.mxu1 }
 0x29a   : > { %v1961_v13 = vsel %vm1942_vm2, %v1862_v12, -inf  ;;  %v1952_v28 = vsel %vm1942_vm2, %v6864_v11, -inf }
 0x29b   : > { %v5890_v14 = vpop.f32.mrf.mxu0  ;;  %1962 = vmax.xlane.f32.xlu1 %v1961_v13  ;;  %v5905_v15 = vpop.f32.mrf.mxu1 }
 0x29d   : > { %v6867_v16 = vpop.f32.mrf.mxu0 }
 0x29e   : > { %v1955_v31 = vsel %vm1942_vm2, %v6867_v16, -inf }
 0x29f   : > { %v5895_v22 = vpop.f32.mrf.mxu0  ;;  %1947 = vmax.xlane.f32.xlu1 %v1946_v17 }
 0x2a1   : > { %v1786_v23 = vpop.f32.mrf.mxu0 }
 0x2a2   : > { %v1958_v29 = vsel %vm1942_vm2, %v1786_v23, -inf }
 0x2a3   : > { %v5900_v24 = vpop.f32.mrf.mxu0 }
 0x2a4   : > { %3226 = vrot.lane.b32.xlu0 %v6859_v1, %s6409_s9 }
 0x2a5   : > { %v6872_v25 = vpop.f32.mrf.mxu0 }
 0x2a6   : > { %v1964_v30 = vsel %vm1942_vm2, %v6872_v25, -inf }
 0x2a7   : > { %v5910_v26 = vpop.f32.mrf.mxu0 }
 0x2b0   : > { %3223 = vrot.lane.b32.xlu1 %v6859_v1, %s6408_s23 }
 0x2c3   : > { %1950 = vmax.xlane.f32.xlu0 %v1949_v27 }
 0x2c7   : > { %1953 = vmax.xlane.f32.xlu0 %v1952_v28 }
 0x2cb   : > { %1959 = vmax.xlane.f32.xlu0 %v1958_v29 }
 0x2cf   : > { %1965 = vmax.xlane.f32.xlu0 %v1964_v30 }
 0x2d4   : > { %1956 = vmax.xlane.f32.xlu1 %v1955_v31 }
 0x2e5   : > { %2929 = vrot.lane.b32.xlu0 %v6885_v32, %s6408_s23  ;;  %3229 = vrot.lane.b32.xlu1 %v6859_v1, %s6407_s21 }
 0x2e9   : > { %2935 = vrot.lane.b32.xlu0 %v6885_v32, %s6407_s21  ;;  %2932 = vrot.lane.b32.xlu1 %v6885_v32, %s6409_s9 }
 0x2ed   : > { %3235 = vrot.lane.b32.xlu0 %v6859_v1, %s6410_s10  ;;  %3232 = vrot.lane.b32.xlu1 %v6859_v1, %s6411_s5 }
 0x2f1   : > { %3241 = vrot.lane.b32.xlu0 %v6859_v1, %s6412_s7  ;;  %3238 = vrot.lane.b32.xlu1 %v6859_v1, %s6413_s11 }
 0x2f5   : > { %2941 = vrot.lane.b32.xlu0 %v6885_v32, %s6410_s10  ;;  %2938 = vrot.lane.b32.xlu1 %v6885_v32, %s6411_s5 }
 0x317   : > { %v1945_v33 = vpop.xlane.xlu0 %1944 }
 0x318   : > { %v1967_v34 = vsub.f32 %v1406_v2, %v1945_v33 }
 0x31a   : > { %v1975_v35 = vmul.f32 1.442695, %v1967_v34 }
 0x31b   : > { %v3227_v48 = vpop.permute.xlu0 %3226 }
 0x31c   : > { %6185 = vpow2.f32 %v1975_v35  ;;  %v3244_v22 = vcombine.low %v6859_v1, %v3227_v48 }
 0x31e   : > { %v3252_v33 = vrot.slane %v3244_v22, %v6649_v3 }
 0x324   : > { %v1963_v36 = vpop.xlane.xlu1 %1962 }
 0x325   : > { %v1973_v37 = vsub.f32 %v1862_v12, %v1963_v36 }
 0x327   : > { %v1987_v38 = vmul.f32 1.442695, %v1973_v37 }
 0x328   : > { %v1948_v40 = vpop.xlane.xlu1 %1947 }
 0x329   : > { %v6907_v39 = vpop.eup %6185  ;;  %6187 = vpow2.f32 %v1987_v38  ;;  %v1968_v41 = vsub.f32 %v1482_v6, %v1948_v40 }
 0x32a   : > { %v1991_v42 = vsel %vm1942_vm2, %v6907_v39, 0.0 }
 0x32b   : > { %1992 = vadd.xlane.f32.xlu1 %v1991_v42  ;;  %v1977_v43 = vmul.f32 1.442695, %v1968_v41 }
 0x32c   : > { %v3224_v7 = vpop.permute.xlu1 %3223 }
 0x32d   : > { %6189 = vpow2.f32 %v1977_v43 }
 0x336   : > { %v6911_v44 = vpop.eup %6187 }
 0x337   : > { %v2009_v45 = vsel %vm1942_vm2, %v6911_v44, 0.0 }
 0x338   : > { %2010 = vadd.xlane.f32.xlu1 %v2009_v45 }
 0x33a   : > { %v6915_v46 = vpop.eup %6189 }
 0x33b   : > { %v1994_v47 = vsel %vm1942_vm2, %v6915_v46, 0.0 }
 0x33c   : > { %1995 = vadd.xlane.f32.xlu0 %v1994_v47 }
 0x34c   : > { %v1951_v55 = vpop.xlane.xlu0 %1950 }
 0x34d   : > { %v1969_v49 = vsub.f32 %v6862_v8, %v1951_v55 }
 0x34f   : > { %v1979_v50 = vmul.f32 1.442695, %v1969_v49 }
 0x350   : > { %v1954_v51 = vpop.xlane.xlu0 %1953 }
 0x351   : > { %6191 = vpow2.f32 %v1979_v50  ;;  %v1970_v52 = vsub.f32 %v6864_v11, %v1954_v51 }
 0x353   : > { %v1981_v63 = vmul.f32 1.442695, %v1970_v52 }
 0x354   : > { %v1960_v2 = vpop.xlane.xlu0 %1959 }
 0x355   : > { %6193 = vpow2.f32 %v1981_v63  ;;  %v1972_v4 = vsub.f32 %v1786_v23, %v1960_v2 }
 0x357   : > { %v1985_v5 = vmul.f32 1.442695, %v1972_v4 }
 0x358   : > { %v1966_v6 = vpop.xlane.xlu0 %1965 }
 0x359   : > { %6195 = vpow2.f32 %v1985_v5  ;;  %v1974_v9 = vsub.f32 %v6872_v25, %v1966_v6  ;;  %v3245_v25 = vcombine.high %v6859_v1, %v3227_v48 }
 0x35b   : > { %v1989_v14 = vmul.f32 1.442695, %v1974_v9  ;;  %v3259_v36 = vrot.slane %v3245_v25, %v6649_v3 }
 0x35c   : > { %v2930_v12 = vpop.permute.xlu0 %2929 }
 0x35d   : > { %v1957_v8 = vpop.xlane.xlu1 %1956  ;;  %6197 = vpow2.f32 %v1989_v14 }
 0x35e   : > { %v6922_v13 = vpop.eup %6191  ;;  %v1971_v11 = vsub.f32 %v6867_v16, %v1957_v8 }
 0x35f   : > { %v1997_v15 = vsel %vm1942_vm2, %v6922_v13, 0.0 }
 0x360   : > { %1998 = vadd.xlane.f32.xlu1 %v1997_v15  ;;  %v2936_v17 = vpop.permute.xlu0 %2935  ;;  %v1983_v23 = vmul.f32 1.442695, %v1971_v11 }
 0x361   : > { %v2966_v24 = vcombine.low %v2930_v12, %v2936_v17  ;;  %v2967_v26 = vcombine.high %v2930_v12, %v2936_v17  ;;  %v3230_v28 = vpop.permute.xlu1 %3229 }
 0x362   : > { %v6928_v27 = vpop.eup %6193  ;;  %6199 = vpow2.f32 %v1983_v23  ;;  %v3260_v29 = vcombine.low %v3224_v7, %v3230_v28  ;;  %v3261_v30 = vcombine.high %v3224_v7, %v3230_v28 }
 0x363   : > { %v2000_v31 = vsel %vm1942_vm2, %v6928_v27, 0.0  ;;  %v2974_v1 = vrot.slane %v2966_v24, %v6649_v3  ;;  %v2981_v45 = vrot.slane %v2967_v26, %v6649_v3 }
 0x364   : > { %v3236_v16 = vpop.permute.xlu0 %3235  ;;  %v3268_v34 = vrot.slane %v3260_v29, %v6649_v3  ;;  %2001 = vadd.xlane.f32.xlu0 %v2000_v31  ;;  %v3275_v37 = vrot.slane %v3261_v30, %v6649_v3 }
 0x365   : > { %v2933_v38 = vpop.permute.xlu1 %2932 }
 0x366   : > { %v6935_v35 = vpop.eup %6195  ;;  %v3308_v40 = vcombine.low %v3252_v33, %v3268_v34  ;;  %v3309_v41 = vcombine.high %v3252_v33, %v3268_v34  ;;  %v2950_v42 = vcombine.low %v6885_v32, %v2933_v38  ;;  %v2951_v43 = vcombine.high %v6885_v32, %v2933_v38 }
 0x367   : > { %v3324_v47 = vcombine.low %v3259_v36, %v3275_v37  ;;  %v3325_v48 = vcombine.high %v3259_v36, %v3275_v37  ;;  %v2006_v55 = vsel %vm1942_vm2, %v6935_v35, 0.0 }
 0x368   : > { %v3242_v49 = vpop.permute.xlu0 %3241  ;;  %v3316_v50 = vrot.slane %v3308_v40, %v6651_v10  ;;  %v3323_v51 = vrot.slane %v3309_v41, %v6651_v10  ;;  %v2958_v52 = vrot.slane %v2950_v42, %v6649_v3  ;;  %v2965_v63 = vrot.slane %v2951_v43, %v6649_v3  ;;  %2007 = vadd.xlane.f32.xlu0 %v2006_v55 }
 0x369   : > { %v3332_v2 = vrot.slane %v3324_v47, %v6651_v10  ;;  %v3339_v4 = vrot.slane %v3325_v48, %v6651_v10  ;;  %v3292_v5 = vcombine.low %v3236_v16, %v3242_v49  ;;  %v3293_v6 = vcombine.high %v3236_v16, %v3242_v49  ;;  %v3233_v7 = vpop.permute.xlu1 %3232 }
 0x36a   : > { %v5680_v9 = vcombine.low %v3316_v50, %v3323_v51  ;;  %v5682_v12 = vcombine.high %v3316_v50, %v3323_v51  ;;  %v3014_v14 = vcombine.low %v2958_v52, %v2974_v1  ;;  %v3015_v8 = vcombine.high %v2958_v52, %v2974_v1  ;;  %v6959_v16 = vpop.eup %6197 }
 0x36b   : > { %v5684_v15 = vcombine.low %v3332_v2, %v3339_v4  ;;  %v5686_v11 = vcombine.high %v3332_v2, %v3339_v4  ;;  %v3030_v17 = vcombine.low %v2965_v63, %v2981_v45  ;;  %v3031_v22 = vcombine.high %v2965_v63, %v2981_v45 }
 0x36c   : > { %v3388_v23 = vrot.slane %v5680_v9, %v6649_v3  ;;  %v3404_v24 = vrot.slane %v5682_v12, %v6649_v3  ;;  %v3022_v26 = vrot.slane %v3014_v14, %v6651_v10  ;;  %v3029_v25 = vrot.slane %v3015_v8, %v6651_v10 }
 0x36d   : > { %v3420_v28 = vrot.slane %v5684_v15, %v6649_v3  ;;  %v3436_v29 = vrot.slane %v5686_v11, %v6649_v3  ;;  %v3038_v30 = vrot.slane %v3030_v17, %v6651_v10  ;;  %v3045_v31 = vrot.slane %v3031_v22, %v6651_v10  ;;  %v3239_v37 = vpop.permute.xlu1 %3238 }
 0x36e   : > { %v3444_v33 = vcombine.low %v3388_v23, %v3404_v24  ;;  %v3445_v34 = vcombine.high %v3388_v23, %v3404_v24  ;;  %v5672_v36 = vcombine.low %v3022_v26, %v3029_v25  ;;  %v5674_v1 = vcombine.high %v3022_v26, %v3029_v25 }
 0x36f   : > { %v6961_v38 = vpop.eup %6199  ;;  %v3476_v40 = vcombine.low %v3420_v28, %v3436_v29  ;;  %v3477_v41 = vcombine.high %v3420_v28, %v3436_v29  ;;  %v5676_v42 = vcombine.low %v3038_v30, %v3045_v31  ;;  %v5678_v43 = vcombine.high %v3038_v30, %v3045_v31 }
 0x370   : > { %v3094_v45 = vrot.slane %v5672_v36, %v6649_v3  ;;  %v3110_v47 = vrot.slane %v5674_v1, %v6649_v3  ;;  %v3300_v48 = vrot.slane %v3292_v5, %v6649_v3  ;;  %v3307_v55 = vrot.slane %v3293_v6, %v6649_v3 }
 0x371   : > { %v3126_v49 = vrot.slane %v5676_v42, %v6649_v3  ;;  %v3142_v50 = vrot.slane %v5678_v43, %v6649_v3  ;;  %v2012_v51 = vsel %vm1942_vm2, %v6959_v16, 0.0  ;;  %v3276_v52 = vcombine.low %v3233_v7, %v3239_v37 }
 0x372   : > { %v3150_v63 = vcombine.low %v3094_v45, %v3110_v47  ;;  %v3151_v2 = vcombine.high %v3094_v45, %v3110_v47  ;;  %2013 = vadd.xlane.f32.xlu0 %v2012_v51  ;;  %v3277_v4 = vcombine.high %v3233_v7, %v3239_v37  ;;  %v2003_v9 = vsel %vm1942_vm2, %v6961_v38, 0.0 }
 0x373   : > { %v3182_v12 = vcombine.low %v3126_v49, %v3142_v50  ;;  %v3183_v14 = vcombine.high %v3126_v49, %v3142_v50  ;;  %v3284_v5 = vrot.slane %v3276_v52, %v6649_v3  ;;  %2004 = vadd.xlane.f32.xlu1 %v2003_v9  ;;  %v6975_v6 = vrot.slane %v3444_v33, %v6651_v10 }
 0x374   : > { %v3291_v8 = vrot.slane %v3277_v4, %v6649_v3  ;;  %v6979_v15 = vrot.slane %v3476_v40, %v6651_v10  ;;  %v6982_v11 = vrot.slane %v3150_v63, %v6651_v10  ;;  %v6985_v7 = vrot.slane %v3445_v34, %v6651_v10 }
 0x375   : > { %v3340_v17 = vcombine.low %v3284_v5, %v3300_v48  ;;  %v3341_v22 = vcombine.high %v3284_v5, %v3300_v48  ;;  %v6988_v23 = vrot.slane %v3182_v12, %v6651_v10  ;;  %v6991_v24 = vrot.slane %v3477_v41, %v6651_v10 }
 0x376   : > { %v3356_v26 = vcombine.low %v3291_v8, %v3307_v55  ;;  %v3357_v25 = vcombine.high %v3291_v8, %v3307_v55  ;;  %v3509_v28 = vcombine.high %v6975_v6, %v6979_v15  ;;  %v6996_v29 = vrot.slane %v3151_v2, %v6651_v10 }
 0x377   : > { %v3348_v30 = vrot.slane %v3340_v17, %v6651_v10  ;;  %v3355_v31 = vrot.slane %v3341_v22, %v6651_v10  ;;  %v3215_v33 = vcombine.high %v6982_v11, %v6988_v23  ;;  %v3511_v34 = vcombine.high %v6985_v7, %v6991_v24 }
 0x378   : > { %v3364_v36 = vrot.slane %v3356_v26, %v6651_v10  ;;  %v3371_v1 = vrot.slane %v3357_v25, %v6651_v10  ;;  %v7007_v37 = vrot.slane %v3183_v14, %v6651_v10  ;;  %v3508_v40 = vcombine.low %v6975_v6, %v6979_v15 }
 0x379   : > { %v5681_v41 = vcombine.low %v3348_v30, %v3355_v31  ;;  %v5683_v42 = vcombine.high %v3348_v30, %v3355_v31  ;;  %v3214_v43 = vcombine.low %v6982_v11, %v6988_v23  ;;  %v3510_v45 = vcombine.low %v6985_v7, %v6991_v24  ;;  %v2939_v31 = vpop.permute.xlu1 %2938 }
 0x37a   : > { %v5685_v47 = vcombine.low %v3364_v36, %v3371_v1  ;;  %v5687_v48 = vcombine.high %v3364_v36, %v3371_v1  ;;  %v3217_v55 = vcombine.high %v6996_v29, %v7007_v37  ;;  %v3216_v49 = vcombine.low %v6996_v29, %v7007_v37 }
 0x37b   : > { %v3395_v50 = vrot.slane %v5681_v41, %v6649_v3  ;;  %v3411_v51 = vrot.slane %v5683_v42, %v6649_v3  ;;  %v2942_v41 = vpop.permute.xlu0 %2941 }
 0x37c   : > { %v3427_v52 = vrot.slane %v5685_v47, %v6649_v3  ;;  %v3443_v63 = vrot.slane %v5687_v48, %v6649_v3 }
 0x37d   : > { %v3460_v2 = vcombine.low %v3395_v50, %v3411_v51  ;;  %v3461_v4 = vcombine.high %v3395_v50, %v3411_v51 }
 0x37e   : > { %v3492_v9 = vcombine.low %v3427_v52, %v3443_v63  ;;  %v3493_v12 = vcombine.high %v3427_v52, %v3443_v63 }
 0x37f   : > { %v7024_v14 = vrot.slane %v3460_v2, %v6651_v10  ;;  %v7027_v5 = vrot.slane %v3461_v4, %v6651_v10 }
 0x380   : > { %v7030_v8 = vrot.slane %v3492_v9, %v6651_v10  ;;  %v7033_v17 = vrot.slane %v3493_v12, %v6651_v10 }
 0x382   : > { %v3513_v22 = vcombine.high %v7024_v14, %v7030_v8  ;;  %v3515_v26 = vcombine.high %v7027_v5, %v7033_v17  ;;  %v3512_v25 = vcombine.low %v7024_v14, %v7030_v8  ;;  %v3514_v30 = vcombine.low %v7027_v5, %v7033_v17 }
 0x384   : > { %2944 = vrot.lane.b32.xlu1 %v6885_v32, %s6413_s11 }
 0x388   : > { %2947 = vrot.lane.b32.xlu0 %v6885_v32, %s6412_s7  ;;  %3520 = vrot.lane.b32.xlu1 %v6631_v54, %s6409_s9 }
 0x38c   : > { %3517 = vrot.lane.b32.xlu0 %v6631_v54, %s6408_s23  ;;  %3523 = vrot.lane.b32.xlu1 %v6631_v54, %s6407_s21 }
 0x3b4   : > { %v1993_v36 = vpop.xlane.xlu1 %1992 }
 0x3b5   : > { %6201 = vrcp.f32 %v1993_v36 }
 0x3c2   : > { %v6202_v1 = vpop.eup %6201 }
 0x3c3   : > { %v2023_v42 = vmul.f32 %v6202_v1, %v6907_v39 }
 0x3c5   : > { %5914 = vmatmul.mubr.msk.f32.vlgmr.msra.gmra.mxu1 %vm1942_vm2, %v2023_v42  ;;  %v1996_v32 = vpop.xlane.xlu0 %1995 }
 0x3c6   : > { %5922 = vmatpush3.msra.mxu1 %v1327_v20  ;;  %5923 = vmatprep.mubr.msk.f32.mxu1 %vm6414_vm0, %v6406_v0  ;;  %6203 = vrcp.f32 %v1996_v32  ;;  %v2011_v20 = vpop.xlane.xlu1 %2010 }
 0x3c7   : > { %5931 = vmatprep.subr.mxu1 %v6406_v0 }
 0x3d3   : > { %v6204_v47 = vpop.eup %6203 }
 0x3d4   : > { %v2024_v48 = vmul.f32 %v6204_v47, %v6915_v46 }
 0x3d6   : > { %5919 = vmatmul.mubr.msk.f32.vlgmr.msra.gmra.mxu0 %vm1942_vm2, %v2024_v48 }
 0x3d7   : > { %5927 = vmatpush3.msra.mxu0 %v1328_v21  ;;  %5928 = vmatprep.mubr.msk.f32.mxu0 %vm6414_vm0, %v6406_v0 }
 0x3d8   : > { %5936 = vmatprep.subr.mxu0 %v6406_v0 }
 0x3e9   : > { %v1999_v39 = vpop.xlane.xlu1 %1998 }
 0x3ea   : > { %6205 = vrcp.f32 %v1999_v39 }
 0x3ed   : > { %v2002_v50 = vpop.xlane.xlu0 %2001 }
 0x3ee   : > { %6207 = vrcp.f32 %v2002_v50 }
 0x3f1   : > { %v2008_v51 = vpop.xlane.xlu0 %2007 }
 0x3f2   : > { %6209 = vrcp.f32 %v2008_v51 }
 0x3f7   : > { %v6206_v52 = vpop.eup %6205 }
 0x3f8   : > { %v2025_v46 = vmul.f32 %v6206_v52, %v6922_v13 }
 0x3fa   : > { %5924 = vmatmul.mubr.msk.f32.vlgmr.msra.gmra.mxu1 %vm1942_vm2, %v2025_v46 }
 0x3fb   : > { %5932 = vmatpush3.msra.mxu1 %v1329_v59  ;;  %5933 = vmatprep.mubr.msk.f32.mxu1 %vm6414_vm0, %v6406_v0  ;;  %v6208_v18 = vpop.eup %6207  ;;  %v2014_v19 = vpop.xlane.xlu0 %2013 }
 0x3fc   : > { %5941 = vmatprep.subr.mxu1 %v6406_v0  ;;  %6211 = vrcp.f32 %v2014_v19  ;;  %v2005_v21 = vpop.xlane.xlu1 %2004  ;;  %v2026_v63 = vmul.f32 %v6208_v18, %v6928_v27 }
 0x3fd   : > { %6213 = vrcp.f32 %v2005_v21 }
 0x3fe   : > { %5929 = vmatmul.mubr.msk.f32.vlgmr.msra.gmra.mxu0 %vm1942_vm2, %v2026_v63  ;;  %6215 = vrcp.f32 %v2011_v20 }
 0x3ff   : > { %v6210_v13 = vpop.eup %6209  ;;  %v2948_v2 = vpop.permute.xlu0 %2947  ;;  %5937 = vmatpush3.msra.mxu0 %v1330_v60  ;;  %5938 = vmatprep.mubr.msk.f32.mxu0 %vm6414_vm0, %v6406_v0 }
 0x400   : > { %v2998_v59 = vcombine.low %v2942_v41, %v2948_v2  ;;  %v2999_v4 = vcombine.high %v2942_v41, %v2948_v2  ;;  %v2945_v9 = vpop.permute.xlu1 %2944  ;;  %5946 = vmatprep.subr.mxu0 %v6406_v0  ;;  %v2028_v12 = vmul.f32 %v6210_v13, %v6935_v35 }
 0x401   : > { %v2982_v27 = vcombine.low %v2939_v31, %v2945_v9  ;;  %v2983_v36 = vcombine.high %v2939_v31, %v2945_v9 }
 0x402   : > { %v3006_v1 = vrot.slane %v2998_v59, %v6649_v3  ;;  %5939 = vmatmul.mubr.msk.f32.vlgmr.msra.gmra.mxu0 %vm1942_vm2, %v2028_v12  ;;  %v3013_v53 = vrot.slane %v2999_v4, %v6649_v3 }
 0x403   : > { %v2990_v56 = vrot.slane %v2982_v27, %v6649_v3  ;;  %v2997_v60 = vrot.slane %v2983_v36, %v6649_v3  ;;  %5947 = vmatpush3.msra.mxu0 %v1332_v61  ;;  %5948 = vmatprep.mubr.msk.f32.mxu0 %vm6414_vm0, %v6406_v0  ;;  %v3518_v46 = vpop.permute.xlu0 %3517 }
 0x404   : > { %v3521_v35 = vpop.permute.xlu1 %3520  ;;  %5956 = vmatprep.subr.mxu0 %v6406_v0 }
 0x405   : > { %v3046_v31 = vcombine.low %v2990_v56, %v3006_v1  ;;  %v3047_v41 = vcombine.high %v2990_v56, %v3006_v1  ;;  %v3062_v42 = vcombine.low %v2997_v60, %v3013_v53  ;;  %v3063_v32 = vcombine.high %v2997_v60, %v3013_v53 }
 0x406   : > { %v3538_v47 = vcombine.low %v6631_v54, %v3521_v35  ;;  %v3539_v50 = vcombine.high %v6631_v54, %v3521_v35 }
 0x407   : > { %v3054_v48 = vrot.slane %v3046_v31, %v6651_v10  ;;  %v3061_v20 = vrot.slane %v3047_v41, %v6651_v10  ;;  %v3070_v39 = vrot.slane %v3062_v42, %v6651_v10  ;;  %v3077_v61 = vrot.slane %v3063_v32, %v6651_v10 }
 0x408   : > { %v3524_v51 = vpop.permute.xlu1 %3523  ;;  %v3546_v2 = vrot.slane %v3538_v47, %v6649_v3  ;;  %v3553_v53 = vrot.slane %v3539_v50, %v6649_v3 }
 0x409   : > { %v6212_v52 = vpop.eup %6211  ;;  %v5673_v18 = vcombine.low %v3054_v48, %v3061_v20  ;;  %v5675_v19 = vcombine.high %v3054_v48, %v3061_v20  ;;  %v5677_v21 = vcombine.low %v3070_v39, %v3077_v61  ;;  %v5679_v63 = vcombine.high %v3070_v39, %v3077_v61 }
 0x40a   : > { %v6214_v13 = vpop.eup %6213  ;;  %v2030_v59 = vmul.f32 %v6212_v52, %v6959_v16  ;;  %v3554_v4 = vcombine.low %v3518_v46, %v3524_v51  ;;  %v3555_v9 = vcombine.high %v3518_v46, %v3524_v51 }
 0x40b   : > { %v3101_v12 = vrot.slane %v5673_v18, %v6649_v3  ;;  %v3117_v27 = vrot.slane %v5675_v19, %v6649_v3  ;;  %v3133_v36 = vrot.slane %v5677_v21, %v6649_v3  ;;  %v3149_v1 = vrot.slane %v5679_v63, %v6649_v3  ;;  %v6216_v20 = vpop.eup %6215 }
 0x40c   : > { %5949 = vmatmul.mubr.msk.f32.vlgmr.msra.gmra.mxu0 %vm1942_vm2, %v2030_v59  ;;  %v3562_v56 = vrot.slane %v3554_v4, %v6649_v3  ;;  %v3569_v60 = vrot.slane %v3555_v9, %v6649_v3  ;;  %v2027_v16 = vmul.f32 %v6214_v13, %v6961_v38 }
 0x40d   : > { %v3166_v35 = vcombine.low %v3101_v12, %v3117_v27  ;;  %v3198_v31 = vcombine.low %v3133_v36, %v3149_v1  ;;  %5957 = vmatpush3.xpose.msk.msra.mxu0 %vm1333_vm1, %v3509_v28  ;;  %5958 = vmatprep.mubr.msk.f32.mxu0 %vm6414_vm0, %v6406_v0  ;;  %v3167_v51 = vcombine.high %v3101_v12, %v3117_v27 }
 0x40e   : > { %v3602_v41 = vcombine.low %v3546_v2, %v3562_v56  ;;  %v3603_v42 = vcombine.high %v3546_v2, %v3562_v56  ;;  %v3618_v32 = vcombine.low %v3553_v53, %v3569_v60  ;;  %v3619_v47 = vcombine.high %v3553_v53, %v3569_v60  ;;  %5966 = vmatprep.subr.mxu0 %v6406_v0 }
 0x40f   : > { %5934 = vmatmul.mubr.msk.f32.vlgmr.msra.gmra.mxu1 %vm1942_vm2, %v2027_v16  ;;  %v7123_v38 = vrot.slane %v3166_v35, %v6651_v10  ;;  %v7126_v48 = vrot.slane %v3198_v31, %v6651_v10  ;;  %v3199_v52 = vcombine.high %v3133_v36, %v3149_v1  ;;  %v3181_v57 = vrot.slane %v3167_v51, %v6651_v10 }
 0x410   : > { %v3610_v28 = vrot.slane %v3602_v41, %v6651_v10  ;;  %v3617_v39 = vrot.slane %v3603_v42, %v6651_v10  ;;  %v3626_v61 = vrot.slane %v3618_v32, %v6651_v10  ;;  %v3633_v50 = vrot.slane %v3619_v47, %v6651_v10  ;;  %5959 = vmatmul.mubr.msk.f32.vlgmr.msra.gmra.mxu0 %vm1333_vm1, %v3215_v33 }
 0x411   : > { %5967 = vmatpush3.xpose.msk.msra.mxu0 %vm1333_vm1, %v3511_v34  ;;  %5968 = vmatprep.mubr.msk.f32.mxu0 %vm6414_vm0, %v6406_v0  ;;  %v2029_v33 = vmul.f32 %v6216_v20, %v6911_v44  ;;  %v3219_v34 = vcombine.high %v7123_v38, %v7126_v48  ;;  %v3213_v58 = vrot.slane %v3199_v52, %v6651_v10 }
 0x412   : > { %v5688_v46 = vcombine.low %v3610_v28, %v3617_v39  ;;  %v5690_v18 = vcombine.high %v3610_v28, %v3617_v39  ;;  %v5692_v19 = vcombine.low %v3626_v61, %v3633_v50  ;;  %v5694_v21 = vcombine.high %v3626_v61, %v3633_v50  ;;  %5976 = vmatprep.subr.mxu0 %v6406_v0 }
 0x413   : > { %5942 = vmatpush3.msra.mxu1 %v1331_v62  ;;  %5943 = vmatprep.mubr.msk.f32.mxu1 %vm6414_vm0, %v6406_v0  ;;  %v3221_v15 = vcombine.high %v3181_v57, %v3213_v58  ;;  %v3218_v7 = vcombine.low %v7123_v38, %v7126_v48  ;;  %v3220_v23 = vcombine.low %v3181_v57, %v3213_v58 }
 0x414   : > { %v3682_v63 = vrot.slane %v5688_v46, %v6649_v3  ;;  %v3698_v13 = vrot.slane %v5690_v18, %v6649_v3  ;;  %v3714_v2 = vrot.slane %v5692_v19, %v6649_v3  ;;  %v3730_v59 = vrot.slane %v5694_v21, %v6649_v3  ;;  %5969 = vmatmul.mubr.msk.f32.vlgmr.msra.gmra.mxu0 %vm1333_vm1, %v3217_v55 }
 0x415   : > { %5977 = vmatpush3.xpose.msk.msra.mxu0 %vm1333_vm1, %v3513_v22  ;;  %5951 = vmatprep.subr.mxu1 %v6406_v0 }
 0x416   : > { %5944 = vmatmul.mubr.msk.f32.vlgmr.msra.gmra.mxu1 %vm1942_vm2, %v2029_v33  ;;  %5978 = vmatprep.mubr.msk.f32.mxu0 %vm6414_vm0, %v6406_v0  ;;  %v3738_v62 = vcombine.low %v3682_v63, %v3698_v13  ;;  %v3770_v44 = vcombine.low %v3714_v2, %v3730_v59  ;;  %v3739_v4 = vcombine.high %v3682_v63, %v3698_v13 }
 0x417   : > { %5952 = vmatpush3.xpose.msk.msra.mxu1 %vm1333_vm1, %v3508_v40  ;;  %5986 = vmatprep.subr.mxu0 %v6406_v0  ;;  %v3771_v55 = vcombine.high %v3714_v2, %v3730_v59 }
 0x418   : > { %5979 = vmatmul.mubr.msk.f32.vlgmr.msra.gmra.mxu0 %vm1333_vm1, %v3219_v34  ;;  %5953 = vmatprep.mubr.msk.f32.mxu1 %vm6414_vm0, %v6406_v0  ;;  %v3746_v22 = vrot.slane %v3738_v62, %v6651_v10  ;;  %v3778_v9 = vrot.slane %v3770_v44, %v6651_v10  ;;  %v7180_v12 = vrot.slane %v3739_v4, %v6651_v10 }
 0x419   : > { %5987 = vmatpush3.xpose.msk.msra.mxu0 %vm1333_vm1, %v3515_v26  ;;  %5961 = vmatprep.subr.mxu1 %v6406_v0  ;;  %v7188_v6 = vrot.slane %v3771_v55, %v6651_v10 }
 0x41a   : > { %5954 = vmatmul.mubr.msk.f32.vlgmr.msra.gmra.mxu1 %vm1333_vm1, %v3214_v43  ;;  %5988 = vmatprep.mubr.msk.f32.mxu0 %vm6414_vm0, %v6406_v0  ;;  %v3803_v40 = vcombine.high %v3746_v22, %v3778_v9  ;;  %v3802_v24 = vcombine.low %v3746_v22, %v3778_v9 }
 0x41b   : > { %5962 = vmatpush3.xpose.msk.msra.mxu1 %vm1333_vm1, %v3510_v45  ;;  %5963 = vmatprep.mubr.msk.f32.mxu1 %vm6414_vm0, %v6406_v0  ;;  %v3805_v26 = vcombine.high %v7180_v12, %v7188_v6  ;;  %v3804_v11 = vcombine.low %v7180_v12, %v7188_v6 }
 0x41c   : > { %5989 = vmatmul.mubr.msk.f32.vlgmr.msra.gmra.mxu0 %vm1333_vm1, %v3221_v15  ;;  %5971 = vmatprep.subr.mxu1 %v6406_v0 }
 0x41d   : > { %5996 = vmatprep.subr.mxu0 %v6406_v0  ;;  %5998 = vmatprep.mubr.msk.f32.mxu0 %vm6414_vm0, %v6406_v0 }
 0x41e   : > { %5964 = vmatmul.mubr.msk.f32.vlgmr.msra.gmra.mxu1 %vm1333_vm1, %v3216_v49  ;;  %5997 = vmatpush3.msra.mxu0 %v3803_v40 }
 0x41f   : > { %5972 = vmatpush3.xpose.msk.msra.mxu1 %vm1333_vm1, %v3512_v25  ;;  %5973 = vmatprep.mubr.msk.f32.mxu1 %vm6414_vm0, %v6406_v0 }
 0x420   : > { %5981 = vmatprep.subr.mxu1 %v6406_v0  ;;  %6006 = vmatprep.subr.mxu0 %v6406_v0 }
 0x422   : > { %5974 = vmatmul.mubr.msk.f32.vlgmr.msra.gmra.mxu1 %vm1333_vm1, %v3218_v7 }
 0x423   : > { %5982 = vmatpush3.xpose.msk.msra.mxu1 %vm1333_vm1, %v3514_v30  ;;  %5983 = vmatprep.mubr.msk.f32.mxu1 %vm6414_vm0, %v6406_v0 }
 0x424   : > { %5991 = vmatprep.subr.mxu1 %v6406_v0 }
 0x426   : > { %5984 = vmatmul.mubr.msk.f32.vlgmr.msra.gmra.mxu1 %vm1333_vm1, %v3220_v23 }
 0x427   : > { %5992 = vmatpush3.msra.mxu1 %v3802_v24  ;;  %5993 = vmatprep.mubr.msk.f32.mxu1 %vm6414_vm0, %v6406_v0 }
 0x428   : > { %6001 = vmatprep.subr.mxu1 %v6406_v0 }
 0x485   : > { %v2100_v29 = vpop.f32.mrf.mxu1 }
 0x487   : > { %v5915_v37 = vpop.f32.mrf.mxu1 }
 0x496   : > { %v2173_v43 = vpop.f32.mrf.mxu0 }
 0x498   : > { %v5920_v45 = vpop.f32.mrf.mxu0 }
 0x4ba   : > { %v2246_v49 = vpop.f32.mrf.mxu1 }
 0x4bb   : > { %v2615_v14 = vcombine.low %v2100_v29, %v2246_v49  ;;  %v2616_v5 = vcombine.high %v2100_v29, %v2246_v49 }
 0x4bc   : > { %v5925_v8 = vpop.f32.mrf.mxu1 }
 0x4bd   : > { %v2623_v36 = vrot.slane %v2615_v14, %v6649_v3  ;;  %v2630_v1 = vrot.slane %v2616_v5, %v6649_v3 }
 0x4be   : > { %v2319_v17 = vpop.f32.mrf.mxu0 }
 0x4bf   : > { %v2631_v25 = vcombine.low %v2173_v43, %v2319_v17  ;;  %v2632_v30 = vcombine.high %v2173_v43, %v2319_v17 }
 0x4c0   : > { %v5930_v27 = vpop.f32.mrf.mxu0 }
 0x4c1   : > { %v2639_v53 = vrot.slane %v2631_v25, %v6649_v3  ;;  %v2646_v56 = vrot.slane %v2632_v30, %v6649_v3 }
 0x4c2   : > { %v2465_v60 = vpop.f32.mrf.mxu0 }
 0x4c3   : > { %v2679_v16 = vcombine.low %v2623_v36, %v2639_v53  ;;  %v2680_v35 = vcombine.high %v2623_v36, %v2639_v53  ;;  %v2695_v31 = vcombine.low %v2630_v1, %v2646_v56  ;;  %v2696_v41 = vcombine.high %v2630_v1, %v2646_v56 }
 0x4c4   : > { %v5940_v42 = vpop.f32.mrf.mxu0 }
 0x4c5   : > { %v2687_v32 = vrot.slane %v2679_v16, %v6651_v10  ;;  %v2694_v47 = vrot.slane %v2680_v35, %v6651_v10  ;;  %v2703_v38 = vrot.slane %v2695_v31, %v6651_v10  ;;  %v2710_v48 = vrot.slane %v2696_v41, %v6651_v10 }
 0x4c7   : > { %v5664_v20 = vcombine.low %v2687_v32, %v2694_v47  ;;  %v5666_v28 = vcombine.high %v2687_v32, %v2694_v47  ;;  %v5668_v39 = vcombine.low %v2703_v38, %v2710_v48  ;;  %v5670_v61 = vcombine.high %v2703_v38, %v2710_v48 }
 0x4c9   : > { %v2759_v50 = vrot.slane %v5664_v20, %v6649_v3  ;;  %v2775_v51 = vrot.slane %v5666_v28, %v6649_v3  ;;  %v2791_v52 = vrot.slane %v5668_v39, %v6649_v3  ;;  %v2807_v46 = vrot.slane %v5670_v61, %v6649_v3 }
 0x4cb   : > { %v2816_v18 = vcombine.high %v2759_v50, %v2775_v51  ;;  %v2848_v19 = vcombine.high %v2791_v52, %v2807_v46  ;;  %v2815_v21 = vcombine.low %v2759_v50, %v2775_v51  ;;  %v2847_v33 = vcombine.low %v2791_v52, %v2807_v46 }
 0x4cc   : > { %v2611_v34 = vpop.f32.mrf.mxu0 }
 0x4cd   : > { %v2663_v63 = vcombine.low %v2465_v60, %v2611_v34  ;;  %v2664_v13 = vcombine.high %v2465_v60, %v2611_v34  ;;  %v7250_v2 = vrot.slane %v2816_v18, %v6651_v10  ;;  %v7253_v59 = vrot.slane %v2848_v19, %v6651_v10 }
 0x4ce   : > { %v5950_v57 = vpop.f32.mrf.mxu0  ;;  %v7256_v58 = vrot.slane %v2815_v21, %v6651_v10  ;;  %v7259_v62 = vrot.slane %v2847_v33, %v6651_v10 }
 0x4cf   : > { %v2392_v44 = vpop.f32.mrf.mxu1  ;;  %v2881_v4 = vcombine.low %v7250_v2, %v7253_v59  ;;  %v2882_v55 = vcombine.high %v7250_v2, %v7253_v59  ;;  %v2671_v5 = vrot.slane %v2663_v63, %v6649_v3  ;;  %v2678_v8 = vrot.slane %v2664_v13, %v6649_v3  ;;  %v5401_v2 = vld [vmem:[#allocation7 + $0x20] sm:$0xff] }
 0x4d0   : > { %v7265_v22 = vpop.f32.mrf.mxu0  ;;  %v2879_v9 = vcombine.low %v7256_v58, %v7259_v62  ;;  %v2880_v15 = vcombine.high %v7256_v58, %v7259_v62 }
 0x4d1   : > { %v4421_v40 = vsel %vm1942_vm2, %v7265_v22, -inf  ;;  %v5935_v7 = vpop.f32.mrf.mxu1 }
 0x4d2   : > { %4422 = vmax.xlane.f32.xlu0 %v4421_v40  ;;  %v5960_v23 = vpop.f32.mrf.mxu0 }
 0x4d4   : > { %v7273_v24 = vpop.f32.mrf.mxu0 }
 0x4d5   : > { %v4427_v51 = vsel %vm1942_vm2, %v7273_v24, -inf }
 0x4d6   : > { %v5970_v29 = vpop.f32.mrf.mxu0  ;;  %v2538_v37 = vpop.f32.mrf.mxu1 }
 0x4d7   : > { %v2647_v43 = vcombine.low %v2392_v44, %v2538_v37  ;;  %v2648_v45 = vcombine.high %v2392_v44, %v2538_v37 }
 0x4d8   : > { %v5945_v49 = vpop.f32.mrf.mxu1  ;;  %v7275_v14 = vpop.f32.mrf.mxu0 }
 0x4d9   : > { %v2655_v17 = vrot.slane %v2647_v43, %v6649_v3  ;;  %v2662_v25 = vrot.slane %v2648_v45, %v6649_v3  ;;  %v4433_v40 = vsel %vm1942_vm2, %v7275_v14, -inf }
 0x4da   : > { %v3882_v30 = vpop.f32.mrf.mxu1  ;;  %v5980_v27 = vpop.f32.mrf.mxu0 }
 0x4db   : > { %v2711_v36 = vcombine.low %v2655_v17, %v2671_v5  ;;  %v2712_v1 = vcombine.high %v2655_v17, %v2671_v5  ;;  %v2727_v53 = vcombine.low %v2662_v25, %v2678_v8  ;;  %v2728_v56 = vcombine.high %v2662_v25, %v2678_v8 }
 0x4dc   : > { %v4418_v60 = vsel %vm1942_vm2, %v3882_v30, -inf  ;;  %v5955_v16 = vpop.f32.mrf.mxu1  ;;  %v7282_v35 = vpop.f32.mrf.mxu0 }
 0x4dd   : > { %v2719_v31 = vrot.slane %v2711_v36, %v6651_v10  ;;  %v2726_v41 = vrot.slane %v2712_v1, %v6651_v10  ;;  %v2735_v42 = vrot.slane %v2727_v53, %v6651_v10  ;;  %v2742_v32 = vrot.slane %v2728_v56, %v6651_v10  ;;  %4419 = vmax.xlane.f32.xlu1 %v4418_v60 }
 0x4de   : > { %v4034_v47 = vpop.f32.mrf.mxu1  ;;  %v5990_v38 = vpop.f32.mrf.mxu0  ;;  %v4439_v27 = vsel %vm1942_vm2, %v7282_v35, -inf }
 0x4df   : > { %v5665_v48 = vcombine.low %v2719_v31, %v2726_v41  ;;  %v5667_v20 = vcombine.high %v2719_v31, %v2726_v41  ;;  %v5669_v28 = vcombine.low %v2735_v42, %v2742_v32  ;;  %v5671_v39 = vcombine.high %v2735_v42, %v2742_v32 }
 0x4e0   : > { %v5965_v61 = vpop.f32.mrf.mxu1  ;;  %v4424_v50 = vsel %vm1942_vm2, %v4034_v47, -inf }
 0x4e1   : > { %v2766_v52 = vrot.slane %v5665_v48, %v6649_v3  ;;  %v2782_v46 = vrot.slane %v5667_v20, %v6649_v3  ;;  %v2798_v18 = vrot.slane %v5669_v28, %v6649_v3  ;;  %v2814_v19 = vrot.slane %v5671_v39, %v6649_v3  ;;  %4425 = vmax.xlane.f32.xlu0 %v4424_v50 }
 0x4e2   : > { %4428 = vmax.xlane.f32.xlu1 %v4427_v51  ;;  %v4186_v21 = vpop.f32.mrf.mxu1 }
 0x4e3   : > { %v4430_v33 = vsel %vm1942_vm2, %v4186_v21, -inf  ;;  %v2831_v34 = vcombine.low %v2766_v52, %v2782_v46  ;;  %v2863_v63 = vcombine.low %v2798_v18, %v2814_v19  ;;  %v2832_v13 = vcombine.high %v2766_v52, %v2782_v46 }
 0x4e4   : > { %v5975_v57 = vpop.f32.mrf.mxu1  ;;  %v2864_v44 = vcombine.high %v2798_v18, %v2814_v19 }
 0x4e5   : > { %4431 = vmax.xlane.f32.xlu0 %v4430_v33  ;;  %v7299_v7 = vrot.slane %v2831_v34, %v6651_v10  ;;  %v7302_v23 = vrot.slane %v2863_v63, %v6651_v10  ;;  %v7305_v29 = vrot.slane %v2832_v13, %v6651_v10 }
 0x4e6   : > { %4434 = vmax.xlane.f32.xlu1 %v4433_v40  ;;  %v4338_v37 = vpop.f32.mrf.mxu1  ;;  %v7308_v43 = vrot.slane %v2864_v44, %v6651_v10 }
 0x4e7   : > { %v4436_v45 = vsel %vm1942_vm2, %v4338_v37, -inf  ;;  %v2884_v49 = vcombine.high %v7299_v7, %v7302_v23  ;;  %v2883_v5 = vcombine.low %v7299_v7, %v7302_v23 }
 0x4e8   : > { %v5985_v8 = vpop.f32.mrf.mxu1  ;;  %v2886_v17 = vcombine.high %v7305_v29, %v7308_v43  ;;  %v2885_v25 = vcombine.low %v7305_v29, %v7308_v43 }
 0x4e9   : > { %4437 = vmax.xlane.f32.xlu0 %v4436_v45 }
 0x4ea   : > { %4440 = vmax.xlane.f32.xlu1 %v4439_v27 }
 0x4fb   : > { %3529 = vrot.lane.b32.xlu1 %v6631_v54, %s6410_s10 }
 0x4ff   : > { %3526 = vrot.lane.b32.xlu0 %v6631_v54, %s6411_s5 }
 0x55b   : > { %v4423_v36 = vpop.xlane.xlu0 %4422 }
 0x55c   : > { %v4443_v1 = vsub.f32 %v7265_v22, %v4423_v36 }
 0x55e   : > { %v4452_v53 = vmul.f32 1.442695, %v4443_v1 }
 0x560   : > { %6217 = vpow2.f32 %v4452_v53 }
 0x566   : > { %v4420_v56 = vpop.xlane.xlu1 %4419 }
 0x567   : > { %v4442_v60 = vsub.f32 %v3882_v30, %v4420_v56 }
 0x569   : > { %v4450_v16 = vmul.f32 1.442695, %v4442_v60 }
 0x56a   : > { %v4426_v31 = vpop.xlane.xlu0 %4425 }
 0x56b   : > { %6219 = vpow2.f32 %v4450_v16  ;;  %v4444_v41 = vsub.f32 %v4034_v47, %v4426_v31  ;;  %v4429_v42 = vpop.xlane.xlu1 %4428 }
 0x56c   : > { %v4445_v32 = vsub.f32 %v7273_v24, %v4429_v42 }
 0x56d   : > { %v6218_v38 = vpop.eup %6217  ;;  %v4454_v48 = vmul.f32 1.442695, %v4444_v41 }
 0x56e   : > { %v4456_v20 = vmul.f32 1.442695, %v4445_v32  ;;  %v4432_v28 = vpop.xlane.xlu0 %4431  ;;  %v4469_v39 = vsel %vm1942_vm2, %v6218_v38, 0.0 }
 0x56f   : > { %6221 = vpow2.f32 %v4454_v48  ;;  %v4446_v61 = vsub.f32 %v4186_v21, %v4432_v28  ;;  %v4435_v22 = vpop.xlane.xlu1 %4434  ;;  %4470 = vadd.xlane.f32.xlu1 %v4469_v39 }
 0x570   : > { %6223 = vpow2.f32 %v4456_v20  ;;  %v4447_v30 = vsub.f32 %v7275_v14, %v4435_v22 }
 0x571   : > { %v4458_v50 = vmul.f32 1.442695, %v4446_v61 }
 0x572   : > { %v4460_v51 = vmul.f32 1.442695, %v4447_v30  ;;  %v4438_v52 = vpop.xlane.xlu0 %4437 }
 0x573   : > { %6225 = vpow2.f32 %v4458_v50  ;;  %v4448_v47 = vsub.f32 %v4338_v37, %v4438_v52  ;;  %v4441_v46 = vpop.xlane.xlu1 %4440 }
 0x574   : > { %6227 = vpow2.f32 %v4460_v51  ;;  %v4449_v24 = vsub.f32 %v7282_v35, %v4441_v46 }
 0x575   : > { %v4462_v18 = vmul.f32 1.442695, %v4448_v47 }
 0x576   : > { %v4464_v19 = vmul.f32 1.442695, %v4449_v24  ;;  %v3527_v53 = vpop.permute.xlu0 %3526 }
 0x577   : > { %6229 = vpow2.f32 %v4462_v18  ;;  %v3530_v36 = vpop.permute.xlu1 %3529 }
 0x578   : > { %v6220_v33 = vpop.eup %6219  ;;  %6231 = vpow2.f32 %v4464_v19 }
 0x579   : > { %v4466_v21 = vsel %vm1942_vm2, %v6220_v33, 0.0 }
 0x57a   : > { %4467 = vadd.xlane.f32.xlu0 %v4466_v21 }
 0x57c   : > { %v6222_v34 = vpop.eup %6221 }
 0x57d   : > { %v6224_v63 = vpop.eup %6223  ;;  %v4472_v14 = vsel %vm1942_vm2, %v6222_v34, 0.0 }
 0x57e   : > { %4473 = vadd.xlane.f32.xlu0 %v4472_v14  ;;  %v4475_v13 = vsel %vm1942_vm2, %v6224_v63, 0.0 }
 0x57f   : > { %4476 = vadd.xlane.f32.xlu1 %v4475_v13 }
 0x580   : > { %v7333_v57 = vpop.eup %6225 }
 0x581   : > { %v7335_v44 = vpop.eup %6227  ;;  %v4478_v35 = vsel %vm1942_vm2, %v7333_v57, 0.0 }
 0x582   : > { %4479 = vadd.xlane.f32.xlu0 %v4478_v35  ;;  %v4481_v40 = vsel %vm1942_vm2, %v7335_v44, 0.0 }
 0x583   : > { %4482 = vadd.xlane.f32.xlu1 %v4481_v40 }
 0x584   : > { %v7341_v37 = vpop.eup %6229 }
 0x585   : > { %v7343_v45 = vpop.eup %6231  ;;  %v4484_v8 = vsel %vm1942_vm2, %v7341_v37, 0.0 }
 0x586   : > { %4485 = vadd.xlane.f32.xlu0 %v4484_v8  ;;  %v4487_v27 = vsel %vm1942_vm2, %v7343_v45, 0.0 }
 0x587   : > { %4488 = vadd.xlane.f32.xlu1 %v4487_v27 }
 0x598   : > { %3535 = vrot.lane.b32.xlu1 %v6631_v54, %s6412_s7 }
 0x59c   : > { %3532 = vrot.lane.b32.xlu0 %v6631_v54, %s6413_s11 }
 0x5f8   : > { %v4471_v1 = vpop.xlane.xlu1 %4470 }
 0x5f9   : > { %6233 = vrcp.f32 %v4471_v1 }
 0x603   : > { %v4468_v56 = vpop.xlane.xlu0 %4467 }
 0x604   : > { %6235 = vrcp.f32 %v4468_v56 }
 0x606   : > { %v6234_v60 = vpop.eup %6233 }
 0x607   : > { %v4474_v16 = vpop.xlane.xlu0 %4473  ;;  %v4499_v31 = vmul.f32 %v6234_v60, %v6218_v38 }
 0x608   : > { %6237 = vrcp.f32 %v4474_v16  ;;  %v4477_v41 = vpop.xlane.xlu1 %4476 }
 0x609   : > { %6239 = vrcp.f32 %v4477_v41  ;;  %5999 = vmatmul.mubr.msk.f32.vlgmr.msra.gmra.mxu0 %vm1942_vm2, %v4499_v31 }
 0x60a   : > { %6007 = vmatpush3.msra.mxu0 %v3805_v26  ;;  %6008 = vmatprep.mubr.msk.f32.mxu0 %vm6414_vm0, %v6406_v0 }
 0x60b   : > { %v4480_v54 = vpop.xlane.xlu0 %4479  ;;  %6016 = vmatprep.subr.mxu0 %v6406_v0 }
 0x60c   : > { %v4483_v42 = vpop.xlane.xlu1 %4482  ;;  %6241 = vrcp.f32 %v4480_v54 }
 0x60d   : > { %6243 = vrcp.f32 %v4483_v42 }
 0x60f   : > { %v4486_v32 = vpop.xlane.xlu0 %4485 }
 0x610   : > { %v4489_v48 = vpop.xlane.xlu1 %4488  ;;  %6245 = vrcp.f32 %v4486_v32 }
 0x611   : > { %v6236_v20 = vpop.eup %6235  ;;  %6247 = vrcp.f32 %v4489_v48 }
 0x612   : > { %v4498_v38 = vmul.f32 %v6236_v20, %v6220_v33 }
 0x613   : > { %v3533_v28 = vpop.permute.xlu0 %3532 }
 0x614   : > { %v3570_v39 = vcombine.low %v3527_v53, %v3533_v28  ;;  %v3571_v61 = vcombine.high %v3527_v53, %v3533_v28  ;;  %v3536_v22 = vpop.permute.xlu1 %3535  ;;  %5994 = vmatmul.mubr.msk.f32.vlgmr.msra.gmra.mxu1 %vm1942_vm2, %v4498_v38 }
 0x615   : > { %v6238_v30 = vpop.eup %6237  ;;  %v3586_v26 = vcombine.low %v3530_v36, %v3536_v22  ;;  %v3587_v50 = vcombine.high %v3530_v36, %v3536_v22  ;;  %6002 = vmatpush3.msra.mxu1 %v3804_v11  ;;  %6003 = vmatprep.mubr.msk.f32.mxu1 %vm6414_vm0, %v6406_v0 }
 0x616   : > { %v6240_v51 = vpop.eup %6239  ;;  %v3578_v52 = vrot.slane %v3570_v39, %v6649_v3  ;;  %v3585_v47 = vrot.slane %v3571_v61, %v6649_v3  ;;  %v4500_v46 = vmul.f32 %v6238_v30, %v6222_v34  ;;  %6011 = vmatprep.subr.mxu1 %v6406_v0 }
 0x617   : > { %v3594_v24 = vrot.slane %v3586_v26, %v6649_v3  ;;  %v3601_v18 = vrot.slane %v3587_v50, %v6649_v3  ;;  %v4501_v19 = vmul.f32 %v6240_v51, %v6224_v63 }
 0x618   : > { %6004 = vmatmul.mubr.msk.f32.vlgmr.msra.gmra.mxu1 %vm1942_vm2, %v4500_v46 }
 0x619   : > { %v3634_v12 = vcombine.low %v3578_v52, %v3594_v24  ;;  %v3635_v6 = vcombine.high %v3578_v52, %v3594_v24  ;;  %v3650_v11 = vcombine.low %v3585_v47, %v3601_v18  ;;  %v3651_v33 = vcombine.high %v3585_v47, %v3601_v18  ;;  %6009 = vmatmul.mubr.msk.f32.vlgmr.msra.gmra.mxu0 %vm1942_vm2, %v4501_v19  ;;  %v6242_v41 = vpop.eup %6241  ;;  %v5411_v52 = vld [vmem:[#allocation7 + $0x70] sm:$0xff] }
 0x61a   : > { %6013 = vmatprep.mubr.msk.f32.mxu1 %vm6414_vm0, %v6406_v0  ;;  %6018 = vmatprep.mubr.msk.f32.mxu0 %vm6414_vm0, %v6406_v0  ;;  %v6244_v54 = vpop.eup %6243  ;;  %v4502_v61 = vmul.f32 %v6242_v41, %v7333_v57  ;;  %v5410_v41 = vld [vmem:[#allocation7 + $0x68] sm:$0xff] }
 0x61b   : > { %v3642_v21 = vrot.slane %v3634_v12, %v6651_v10  ;;  %v3649_v34 = vrot.slane %v3635_v6, %v6651_v10  ;;  %v3658_v63 = vrot.slane %v3650_v11, %v6651_v10  ;;  %v3665_v14 = vrot.slane %v3651_v33, %v6651_v10 }
 0x61c   : > { %v4503_v22 = vmul.f32 %v6244_v54, %v7335_v44  ;;  %v5412_v44 = vld [vmem:[#allocation7 + $0x78] sm:$0xff]  ;;  %v5409_v54 = vld [vmem:[#allocation7 + $0x60] sm:$0xff] }
 0x61d   : > { %v5689_v13 = vcombine.low %v3642_v21, %v3649_v34  ;;  %v5691_v35 = vcombine.high %v3642_v21, %v3649_v34  ;;  %v5693_v40 = vcombine.low %v3658_v63, %v3665_v14  ;;  %v5695_v8 = vcombine.high %v3658_v63, %v3665_v14  ;;  %v6246_v38 = vpop.eup %6245 }
 0x61e   : > { %v6248_v30 = vpop.eup %6247  ;;  %v4504_v51 = vmul.f32 %v6246_v38, %v7341_v37 }
 0x61f   : > { %v3689_v27 = vrot.slane %v5689_v13, %v6649_v3  ;;  %v3705_v36 = vrot.slane %v5691_v35, %v6649_v3  ;;  %v3721_v1 = vrot.slane %v5693_v40, %v6649_v3  ;;  %v3737_v53 = vrot.slane %v5695_v8, %v6649_v3 }
 0x620   : > { %v4505_v57 = vmul.f32 %v6248_v30, %v7343_v45  ;;  %v5407_v30 = vld [vmem:[#allocation7 + $0x50] sm:$0xff] }
 0x621   : > { %v3754_v56 = vcombine.low %v3689_v27, %v3705_v36  ;;  %v3786_v60 = vcombine.low %v3721_v1, %v3737_v53  ;;  %v3755_v16 = vcombine.high %v3689_v27, %v3705_v36  ;;  %v3787_v31 = vcombine.high %v3721_v1, %v3737_v53 }
 0x623   : > { %v3762_v42 = vrot.slane %v3754_v56, %v6651_v10  ;;  %v3794_v32 = vrot.slane %v3786_v60, %v6651_v10  ;;  %v3769_v48 = vrot.slane %v3755_v16, %v6651_v10  ;;  %v3801_v20 = vrot.slane %v3787_v31, %v6651_v10 }
 0x625   : > { %v3806_v28 = vcombine.low %v3762_v42, %v3794_v32  ;;  %v3807_v39 = vcombine.high %v3762_v42, %v3794_v32  ;;  %v3808_v26 = vcombine.low %v3769_v48, %v3801_v20  ;;  %v3809_v50 = vcombine.high %v3769_v48, %v3801_v20 }
 0x627   : > { %6012 = vmatpush3.msra.mxu1 %v3806_v28  ;;  %6017 = vmatpush3.msra.mxu0 %v3807_v39 }
 0x628   : > { %6014 = vmatmul.mubr.msk.f32.vlgmr.msra.gmra.mxu1 %vm1942_vm2, %v4502_v61  ;;  %6019 = vmatmul.mubr.msk.f32.vlgmr.msra.gmra.mxu0 %vm1942_vm2, %v4503_v22  ;;  %v5408_v22 = vld [vmem:[#allocation7 + $0x58] sm:$0xff] }
 0x629   : > { %6021 = vmatprep.subr.mxu1 %v6406_v0  ;;  %6026 = vmatprep.subr.mxu0 %v6406_v0 }
 0x62a   : > { %6022 = vmatpush3.msra.mxu1 %v3808_v26  ;;  %6027 = vmatpush3.msra.mxu0 %v3809_v50 }
 0x62b   : > { %6023 = vmatprep.mubr.msk.f32.mxu1 %vm6414_vm0, %v6406_v0  ;;  %6028 = vmatprep.mubr.msk.f32.mxu0 %vm6414_vm0, %v6406_v0 }
 0x62c   : > { %6024 = vmatmul.mubr.msk.f32.vlgmr.msra.gmra.mxu1 %vm1942_vm2, %v4504_v51  ;;  %6029 = vmatmul.mubr.msk.f32.vlgmr.msra.gmra.mxu0 %vm1942_vm2, %v4505_v57 }
 0x62d   : > { %6031 = vmatprep.subr.mxu1 %v5412_v44 }
 0x62e   : > { %6032 = vmatpush3.msra.mxu1 %v5412_v44 }
 0x62f   : > { %6033 = vmatprep.subr.mxu1 %v5411_v52 }
 0x630   : > { %6034 = vmatpush3.msra.mxu1 %v5411_v52 }
 0x631   : > { %6035 = vmatprep.subr.mxu1 %v5410_v41 }
 0x632   : > { %6036 = vmatpush3.msra.mxu1 %v5410_v41 }
 0x633   : > { %6037 = vmatprep.subr.mxu1 %v5409_v54 }
 0x634   : > { %6038 = vmatpush3.msra.mxu1 %v5409_v54 }
 0x635   : > { %6039 = vmatprep.subr.mxu1 %v5408_v22 }
 0x636   : > { %6040 = vmatpush3.msra.mxu1 %v5408_v22 }
 0x637   : > { %6041 = vmatprep.subr.mxu1 %v5407_v30 }
 0x638   : > { %6042 = vmatpush3.msra.mxu1 %v5407_v30  ;;  %v5399_v30 = vld [vmem:[#allocation7 + $0x10] sm:$0xff] }
 0x6c9   : > { %v4648_v47 = vpop.f32.mrf.mxu0 }
 0x6cb   : > { %v6000_v37 = vpop.f32.mrf.mxu0 }
 0x6d4   : > { %v4575_v46 = vpop.f32.mrf.mxu1 }
 0x6d6   : > { %v5995_v45 = vpop.f32.mrf.mxu1 }
 0x6d8   : > { %v4721_v24 = vpop.f32.mrf.mxu1 }
 0x6d9   : > { %v5090_v18 = vcombine.low %v4575_v46, %v4721_v24  ;;  %v5091_v19 = vcombine.high %v4575_v46, %v4721_v24  ;;  %v4794_v12 = vpop.f32.mrf.mxu0 }
 0x6da   : > { %v5106_v6 = vcombine.low %v4648_v47, %v4794_v12  ;;  %v5107_v0 = vcombine.high %v4648_v47, %v4794_v12  ;;  %v6005_v11 = vpop.f32.mrf.mxu1  ;;  %v5406_v47 = vld [vmem:[#allocation7 + $0x48] sm:$0xff] }
 0x6db   : > { %v5098_v33 = vrot.slane %v5090_v18, %v6649_v3  ;;  %v5105_v21 = vrot.slane %v5091_v19, %v6649_v3  ;;  %v6010_v34 = vpop.f32.mrf.mxu0  ;;  %v5405_v19 = vld [vmem:[#allocation7 + $0x40] sm:$0xff]  ;;  %6043 = vmatprep.subr.mxu1 %v5406_v47 }
 0x6dc   : > { %v5114_v63 = vrot.slane %v5106_v6, %v6649_v3  ;;  %v5121_v14 = vrot.slane %v5107_v0, %v6649_v3  ;;  %6044 = vmatpush3.msra.mxu1 %v5406_v47  ;;  %v5398_v47 = vld [vmem:[#allocation7 + $0x8] sm:$0xff] }
 0x6dd   : > { %6045 = vmatprep.subr.mxu1 %v5405_v19 }
 0x6de   : > { %v5154_v13 = vcombine.low %v5098_v33, %v5114_v63  ;;  %v5155_v35 = vcombine.high %v5098_v33, %v5114_v63  ;;  %v5170_v40 = vcombine.low %v5105_v21, %v5121_v14  ;;  %v5171_v8 = vcombine.high %v5105_v21, %v5121_v14  ;;  %6046 = vmatpush3.msra.mxu1 %v5405_v19 }
 0x6e0   : > { %v5162_v27 = vrot.slane %v5154_v13, %v6651_v10  ;;  %v5169_v36 = vrot.slane %v5155_v35, %v6651_v10  ;;  %v5178_v1 = vrot.slane %v5170_v40, %v6651_v10  ;;  %v5185_v53 = vrot.slane %v5171_v8, %v6651_v10  ;;  %v5404_v13 = vld [vmem:[#allocation7 + $0x38] sm:$0xff] }
 0x6e1   : > { %6047 = vmatprep.subr.mxu1 %v5404_v13 }
 0x6e2   : > { %v5720_v56 = vcombine.low %v5162_v27, %v5169_v36  ;;  %v5722_v60 = vcombine.high %v5162_v27, %v5169_v36  ;;  %v5724_v16 = vcombine.low %v5178_v1, %v5185_v53  ;;  %v5726_v31 = vcombine.high %v5178_v1, %v5185_v53  ;;  %v5403_v36 = vld [vmem:[#allocation7 + $0x30] sm:$0xff]  ;;  %6048 = vmatpush3.msra.mxu1 %v5404_v13 }
 0x6e3   : > { %6049 = vmatprep.subr.mxu1 %v5403_v36 }
 0x6e4   : > { %v5234_v42 = vrot.slane %v5720_v56, %v6649_v3  ;;  %v5250_v32 = vrot.slane %v5722_v60, %v6649_v3  ;;  %v5266_v48 = vrot.slane %v5724_v16, %v6649_v3  ;;  %v5282_v20 = vrot.slane %v5726_v31, %v6649_v3  ;;  %v5402_v31 = vld [vmem:[#allocation7 + $0x28] sm:$0xff]  ;;  %6050 = vmatpush3.msra.mxu1 %v5403_v36 }
 0x6e5   : > { %6051 = vmatprep.subr.mxu1 %v5402_v31 }
 0x6e6   : > { %v5291_v38 = vcombine.high %v5234_v42, %v5250_v32  ;;  %v5323_v28 = vcombine.high %v5266_v48, %v5282_v20  ;;  %v5290_v39 = vcombine.low %v5234_v42, %v5250_v32  ;;  %v5322_v61 = vcombine.low %v5266_v48, %v5282_v20  ;;  %6052 = vmatpush3.msra.mxu1 %v5402_v31 }
 0x6e7   : > { %6053 = vmatprep.subr.mxu1 %v5401_v2 }
 0x6e8   : > { %v4867_v26 = vpop.f32.mrf.mxu1  ;;  %v4940_v50 = vpop.f32.mrf.mxu0  ;;  %v5305_v51 = vrot.slane %v5291_v38, %v6651_v10  ;;  %v5337_v57 = vrot.slane %v5323_v28, %v6651_v10  ;;  %v7418_v44 = vrot.slane %v5290_v39, %v6651_v10  ;;  %v7421_v52 = vrot.slane %v5322_v61, %v6651_v10  ;;  %v5400_v38 = vld [vmem:[#allocation7 + $0x18] sm:$0xff]  ;;  %6054 = vmatpush3.msra.mxu1 %v5401_v2  ;;  %v5728_v2 = vld [vmem:[%s7536_s3] ss:$0 sm:$0xff] }
 0x6e9   : > { %6055 = vmatprep.subr.mxu1 %v5400_v38 }
 0x6ea   : > { %v6015_v37 = vpop.f32.mrf.mxu1  ;;  %v6020_v46 = vpop.f32.mrf.mxu0  ;;  %v5356_v45 = vcombine.low %v5305_v51, %v5337_v57  ;;  %v5355_v24 = vcombine.high %v7418_v44, %v7421_v52  ;;  %v5354_v18 = vcombine.low %v7418_v44, %v7421_v52  ;;  %v5357_v33 = vcombine.high %v5305_v51, %v5337_v57  ;;  %6056 = vmatpush3.msra.mxu1 %v5400_v38 }
 0x6eb   : > { %6057 = vmatprep.subr.mxu1 %v5399_v30 }
 0x6ec   : > { %v5013_v12 = vpop.f32.mrf.mxu1  ;;  %v5086_v6 = vpop.f32.mrf.mxu0  ;;  %v6155_v0 = vpack.i.bf16 %v5356_v45, %v2881_v4  ;;  %v6150_v11 = vpack.i.bf16 %v5355_v24, %v2880_v15  ;;  %v6160_v1 = vpack.i.bf16 %v5357_v33, %v2882_v55  ;;  %6058 = vmatpush3.msra.mxu1 %v5399_v30 }
 0x6ed   : > { %v5122_v21 = vcombine.low %v4867_v26, %v5013_v12  ;;  %v5123_v34 = vcombine.high %v4867_v26, %v5013_v12  ;;  %v5138_v63 = vcombine.low %v4940_v50, %v5086_v6  ;;  %v5139_v14 = vcombine.high %v4940_v50, %v5086_v6  ;;  %6059 = vmatprep.subr.mxu1 %v5398_v47 }
 0x6ee   : > { %v6025_v35 = vpop.f32.mrf.mxu1  ;;  %6156 = vrot.lane.b32.xlu1 %v6155_v0, %s6413_s11  ;;  %6151 = vrot.lane.b32.xlu0 %v6150_v11, %s6412_s7  ;;  %v6030_v40 = vpop.f32.mrf.mxu0 }
 0x6ef   : > { %v5130_v4 = vrot.slane %v5122_v21, %v6649_v3  ;;  %v5137_v8 = vrot.slane %v5123_v34, %v6649_v3  ;;  %v5146_v15 = vrot.slane %v5138_v63, %v6649_v3  ;;  %v5153_v27 = vrot.slane %v5139_v14, %v6649_v3  ;;  %6060 = vmatpush3.msra.mxu1 %v5398_v47 }
 0x6f1   : > { %v5186_v53 = vcombine.low %v5130_v4, %v5146_v15  ;;  %v5187_v56 = vcombine.high %v5130_v4, %v5146_v15  ;;  %v5202_v60 = vcombine.low %v5137_v8, %v5153_v27  ;;  %v5203_v16 = vcombine.high %v5137_v8, %v5153_v27 }
 0x6f2   : > { %6161 = vrot.lane.b32.xlu0 %v6160_v1, %s6410_s10 }
 0x6f3   : > { %v5194_v41 = vrot.slane %v5186_v53, %v6651_v10  ;;  %v5201_v54 = vrot.slane %v5187_v56, %v6651_v10  ;;  %v5210_v42 = vrot.slane %v5202_v60, %v6651_v10  ;;  %v5217_v32 = vrot.slane %v5203_v16, %v6651_v10 }
 0x6f5   : > { %v5721_v59 = vcombine.low %v5194_v41, %v5201_v54  ;;  %v5723_v55 = vcombine.high %v5194_v41, %v5201_v54  ;;  %v5725_v48 = vcombine.low %v5210_v42, %v5217_v32  ;;  %v5727_v20 = vcombine.high %v5210_v42, %v5217_v32 }
 0x6f7   : > { %v5241_v28 = vrot.slane %v5721_v59, %v6649_v3  ;;  %v5257_v39 = vrot.slane %v5723_v55, %v6649_v3  ;;  %v5273_v61 = vrot.slane %v5725_v48, %v6649_v3  ;;  %v5289_v22 = vrot.slane %v5727_v20, %v6649_v3  ;;  %v5397_v3 = vld [vmem:[#allocation7] sm:$0xff] }
 0x6f8   : > { %6061 = vmatprep.subr.mxu1 %v5397_v3 }
 0x6f9   : > { %v5306_v26 = vcombine.low %v5241_v28, %v5257_v39  ;;  %v5338_v50 = vcombine.low %v5273_v61, %v5289_v22  ;;  %v5307_v51 = vcombine.high %v5241_v28, %v5257_v39  ;;  %v5339_v57 = vcombine.high %v5273_v61, %v5289_v22  ;;  %6062 = vmatpush3.msra.mxu1 %v5397_v3 }
 0x6fb   : > { %v5314_v37 = vrot.slane %v5306_v26, %v6651_v10  ;;  %v5346_v46 = vrot.slane %v5338_v50, %v6651_v10  ;;  %v5321_v45 = vrot.slane %v5307_v51, %v6651_v10  ;;  %v5353_v24 = vrot.slane %v5339_v57, %v6651_v10 }
 0x6fd   : > { %v5359_v19 = vcombine.high %v5314_v37, %v5346_v46  ;;  %v5358_v12 = vcombine.low %v5314_v37, %v5346_v46  ;;  %v5361_v11 = vcombine.high %v5321_v45, %v5353_v24  ;;  %v5360_v33 = vcombine.low %v5321_v45, %v5353_v24 }
 0x6ff   : > { %v6170_v6 = vpack.i.bf16 %v5359_v19, %v2884_v49  ;;  %v6165_v0 = vpack.i.bf16 %v5358_v12, %v2883_v5  ;;  %v6180_v10 = vpack.i.bf16 %v5361_v11, %v2886_v17  ;;  %v6175_v21 = vpack.i.bf16 %v5360_v33, %v2885_v25 }
 0x701   : > { %6171 = vrot.lane.b32.xlu0 %v6170_v6, %s6407_s21  ;;  %6166 = vrot.lane.b32.xlu1 %v6165_v0, %s6411_s5  ;;  %s5498_s21 = scalar_lea.sflag [#allocation4], %s6578_s12 }
 0x705   : > { %6181 = vrot.lane.b32.xlu0 %v6180_v10, %s6408_s23  ;;  %6176 = vrot.lane.b32.xlu1 %v6175_v21, %s6409_s9  ;;  %s6333_s23 = sshll.u32 %s6417_s19, 4  ;;  %s6334_s23 = int_to_ptr.vmem [resolvable:$false] %s6333_s23 }
 0x706   : > { %s6335_s9 = scalar_lea.vmem %s6334_s23, 512  ;;  %p6336_p6 = scmp.lt.s32.totalorder %s7485_s30, %s6334_s23 }
 0x707   : > { %p6337_p12 = scmp.lt.s32.totalorder %s6335_s9, %s6329_s20 }
 0x709   : > { %p6338_p3 = por %p6337_p12, %p6336_p6 }
 0x70b   : > { %p6339_p9 = pnand %p6338_p3, %p6332_p2 }
 0x760   : > { %v6152_v7 = vpop.permute.xlu0 %6151  ;;  %v6157_v23 = vpop.permute.xlu1 %6156 }
 0x761   : > { %v6154_v49 = vunpack.i.h.bf16 %v6152_v7  ;;  %v6153_v5 = vunpack.i.l.bf16 %v6152_v7  ;;  %v6159_v63 = vunpack.i.h.bf16 %v6157_v23  ;;  %v6158_v14 = vunpack.i.l.bf16 %v6157_v23 }
 0x763   : > { %v2915_v17 = vsel %vm1333_vm1, %v2879_v9, %v6153_v5  ;;  %v5390_v29 = vsel %vm1333_vm1, %v5354_v18, %v6154_v49 }
 0x764   : > { %v6162_v34 = vpop.permute.xlu0 %6161  ;;  %v2917_v40 = vsel %vm2916_vm3, %v2915_v17, %v6158_v14  ;;  %v5391_v4 = vsel %vm2916_vm3, %v5390_v29, %v6159_v63 }
 0x765   : > { %v6164_v43 = vunpack.i.h.bf16 %v6162_v34  ;;  %v6163_v25 = vunpack.i.l.bf16 %v6162_v34 }
 0x767   : > { %v2919_v27 = vsel %vm2918_vm4, %v2917_v40, %v6163_v25  ;;  %v5392_v36 = vsel %vm2918_vm4, %v5391_v4, %v6164_v43 }
 0x773   : > { %v6172_v13 = vpop.permute.xlu0 %6171  ;;  %v6167_v35 = vpop.permute.xlu1 %6166 }
 0x774   : > { %v6169_v8 = vunpack.i.h.bf16 %v6167_v35  ;;  %v6168_v15 = vunpack.i.l.bf16 %v6167_v35  ;;  %v6174_v58 = vunpack.i.h.bf16 %v6172_v13  ;;  %v6173_v62 = vunpack.i.l.bf16 %v6172_v13 }
 0x776   : > { %v5393_v9 = vsel %vm2920_vm5, %v5392_v36, %v6169_v8  ;;  %v2921_v1 = vsel %vm2920_vm5, %v2919_v27, %v6168_v15 }
 0x777   : > { %v6182_v44 = vpop.permute.xlu0 %6181  ;;  %v6177_v52 = vpop.permute.xlu1 %6176  ;;  %v5394_v16 = vsel %vm2922_vm6, %v5393_v9, %v6174_v58  ;;  %v2923_v31 = vsel %vm2922_vm6, %v2921_v1, %v6173_v62 }
 0x778   : > { %v6184_v18 = vunpack.i.h.bf16 %v6182_v44  ;;  %v6183_v53 = vunpack.i.l.bf16 %v6182_v44  ;;  %v6179_v56 = vunpack.i.h.bf16 %v6177_v52  ;;  %v6178_v60 = vunpack.i.l.bf16 %v6177_v52 }
 0x77a   : > { %v5395_v41 = vsel %vm2924_vm7, %v5394_v16, %v6179_v56  ;;  %v2925_v54 = vsel %vm2924_vm7, %v2923_v31, %v6178_v60 }
 0x77b   : > { %v2927_v42 = vsel %vm2926_vm8, %v2925_v54, %v6183_v53  ;;  %v5396_v32 = vsel %vm2926_vm8, %v5395_v41, %v6184_v18 }
 0x77c   : > { %6063 = vmatprep.mubr.f32.mxu1 %v2927_v42 }
 0x77d   : > { %6064 = vmatmul.mubr.f32.vlgmr.msra.gmra.mxu1 %v5396_v32 }
 0x83d   : > { %v6065_v59 = vpop.f32.mrf.mxu1 }
 0x83e   : > { %v5492_v55 = vadd.f32 %v6065_v59, %v5728_v2 }
 0x83f   : > { %v5486_v48 = vpop.f32.mrf.mxu1 }
 0x840   : > { %5496 = vst [vmem:[%s244_s26 + $0x8] sm:$0xff] %v5492_v55  ;;  %v5487_v20 = vadd.f32 %v5728_v2, %v5486_v48 }
 0x842   : > { %5495 = vst [vmem:[%s244_s26] sm:$0xff] %v5487_v20 }
 0x843   : > { %6342 = shalt.err (!%p6339_p9)
}
 0x844   : > { %s6343_s10 = scalar_lea.hbm %s7490_s8, 256  ;;  %s6347_s11 = scalar_lea.hbm %s7537_s4, 512 }
 0x845   : > { %p6344_p13 = scmp.ne.s32.totalorder %s7490_s8, %s6343_s10  ;;  %p6348_p4 = scmp.lt.s32.totalorder %s7490_s8, %s7537_s4 }
 0x846   : > { %p6349_p8 = scmp.lt.s32.totalorder %s6347_s11, %s6343_s10 }
 0x847   : > { %p6345_p5 = pnand %p6344_p13, %p7553_p10 }
 0x848   : > { %p6350_p7 = por %p6349_p8, %p6348_p4 }
 0x849   : > { %p6346_p0 = pneg %p6345_p5 }
 0x84b   : > { %p6351_p11 = pnand %p6350_p7, %p6346_p0 }
 0x84d   : > { %6354 = shalt.err (!%p6351_p11)
}
 0x84e   : > { %s6418_s26 = smov 128   ;;  %s6419_s6 = smov 8  }
 0x84f   : > { %6076 = dma.vmem_to_hbm [thread:$0]  (%p7553_p10), %s7485_s30, 256, %s7490_s8, %s5498_s21, %s6418_s26, %s6418_s26, %s6419_s6  }
 0x850 PF: > { %s5526_s14 = sand.u32 1, %s6385_s15   ;;  %p7554_p1 = scmp.ne.s32.totalorder %s7543_s22, 0 }
 0x851   : > { %p7555_p2 = scmp.ge.s32.totalorder %s6397_s18, 2  ;;  %s5527_s27 = scalar_lea.sflag [#allocation4], %s5526_s14 }
 0x853   : > { %p6090_p6 = pnand %p7555_p2, %p7554_p1 }
 0x855   : > { %p6091_p12 = pneg %p6090_p6 }
 0x857   : > { %6380 = dma.done.wait (%p6091_p12), %s5527_s27, 256  }
 0x858   : > { %6382 = vsyncadd (%p6091_p12), %s5527_s27, 4294967040  ;;  %p18_p3 = scmp.ge.s32.totalorder %s6520_s13, 4   ;;  %s7556_s15 = smov %s6389_s16 }
 0x859   : > { %s7557_s16 = smov %s6393_s17  ;;  %s7558_s17 = smov %s6529_s24 }
 0x85a   : > { %s7559_s18 = smov %s6520_s13  ;;  %20 = sbr.rel (!%p18_p3) target bundleno = 6 (0x6), region = 89 }
 0x85f   :  { %5532 = vsyncpa [#allocation3], 1 }
 0x860   :  { %5534 = vsyncpa [#allocation3 + $0x1], 1 }
 0x861   :  { %5535 = vsyncpa [#allocation6], 1 }
 0x862   :  { %5536 = vsyncpa [#allocation4], 1 }
 0x863   :  { %5538 = vsyncpa [#allocation4 + $0x1], 1 }

</bundles_post_ra>
